<compile_context>
chip_gen: v7x
topology: tpu7x:2x2x1
jax: 0.10.0
libtpu: 0.0.40
codegen_flags: <defaults>
</compile_context>

<pallas_src>
import functools

import jax
import jax.numpy as jnp
import numpy as np
from jax import lax
from jax.experimental import pallas as pl
from jax.experimental.pallas import tpu as pltpu


def _discriminator_kernel(x_ref, w1_ref, w2_ref, w3_ref, w4_ref, bias_ref,
                          skill_col_ref, skill_row_ref, out_ref,
                          fn_sc, pos_sc,
                          *, temperature: float, group: int, n_groups: int):
    H = w1_ref.shape[1]
    n = w4_ref.shape[1]

    b1 = bias_ref[0:1, :H]
    b2 = bias_ref[1:2, :H]
    b3 = bias_ref[2:3, :H]
    b4 = bias_ref[3:4, :n]

    # ---- 4-layer MLP (Linear+ReLU x3, Linear) + F.normalize, ONCE for the
    # whole batch.  bf16 operands on the MXU, f32 accumulation / bias / ReLU.
    h = jnp.dot(x_ref[...], w1_ref[...], preferred_element_type=jnp.float32) + b1
    h = jnp.maximum(h, 0.0).astype(jnp.bfloat16)
    h = jnp.dot(h, w2_ref[...], preferred_element_type=jnp.float32) + b2
    h = jnp.maximum(h, 0.0).astype(jnp.bfloat16)
    h = jnp.dot(h, w3_ref[...], preferred_element_type=jnp.float32) + b3
    h = jnp.maximum(h, 0.0).astype(jnp.bfloat16)
    f = jnp.dot(h, w4_ref[...], preferred_element_type=jnp.float32) + b4   # [B, n]

    # F.normalize(dim=1, eps=1e-12)  ==  f * rsqrt(max(||f||^2, 1e-24))
    ss = jnp.sum(f * f, axis=1, keepdims=True)
    fn = f * lax.rsqrt(jnp.maximum(ss, 1e-24))                              # [B, n] f32
    fn_sc[...] = fn

    B = fn.shape[0]
    inv_t = 1.0 / temperature

    # ---- similarity of every row against every row (one MXU push).
    fn_b = fn.astype(jnp.bfloat16)
    sim = lax.dot_general(fn_b, fn_b, (((1,), (1,)), ((), ())),
                          preferred_element_type=jnp.float32)               # [B, B]
    sim_t = sim * inv_t

    # diagonal-exclusion bias generated in-kernel (no B x B HBM array).
    row_ids = lax.broadcasted_iota(jnp.int32, (B, B), 0)
    col_ids = lax.broadcasted_iota(jnp.int32, (B, B), 1)
    diag_bias = jnp.where(row_ids == col_ids, -1e30, 0.0)
    # off-diagonal row max (strictly diagonal-only mask; functionally load-bearing)
    row_max = jnp.max(sim_t + diag_bias, axis=1, keepdims=True)             # [B, 1]

    # negatives: same-skill mask (diagonal trivially included) folded into an
    # additive -1e30 bias before the exp, so negatives are a plain row-sum.
    lab_bias = jnp.where(skill_row_ref[...] == skill_col_ref[...], -1e30, 0.0)  # [B, B]
    e = jnp.exp(sim_t - row_max + lab_bias)
    negatives = jnp.sum(e, axis=1, keepdims=True)                           # [B, 1]

    # positives: other_positive[i] = fn[(i // group) * group + (group - 1)]
    # Static (unrolled) loop over groups; all slices are static ref views.
    for g in range(n_groups):
        a = g * group
        seg = fn_sc[a:a + group, :]                                         # [group, n]
        last = fn_sc[a + group - 1:a + group, :]                            # [1, n]
        pos_sc[a:a + group, :] = jnp.sum(jnp.exp(seg * last),
                                         axis=1, keepdims=True)             # [group, 1]

    eps = 1e-6
    positives = pos_sc[...]                                                 # [B, 1]
    ratio = positives * pl.reciprocal(negatives + eps, approx=True)
    loss = -jnp.log(ratio + eps)                                            # [B, 1]
    out_ref[...] = jnp.mean(loss).reshape(1, 1)


def discriminator_forward(x, skill, params, *, temperature=0.5, group=50):
    B, S = x.shape
    assert B % group == 0, "batch must be a multiple of the group size (50)"
    G = B // group
    w1, b1, w2, b2, w3, b3, w4, b4 = params
    H = w1.shape[1]
    n = w4.shape[1]
    assert n <= H

    # bf16 MXU operands (accumulation stays f32 inside the kernel)
    x_bf = x.astype(jnp.bfloat16)
    w1b, w2b, w3b, w4b = (w.astype(jnp.bfloat16) for w in (w1, w2, w3, w4))

    # pack the four tiny bias vectors into one (4, H) f32 operand
    bias_pack = jnp.zeros((4, H), jnp.float32)
    bias_pack = bias_pack.at[0, :H].set(b1.reshape(-1))
    bias_pack = bias_pack.at[1, :H].set(b2.reshape(-1))
    bias_pack = bias_pack.at[2, :H].set(b3.reshape(-1))
    bias_pack = bias_pack.at[3, :n].set(b4.reshape(-1))

    skill = skill.astype(jnp.int32)
    skill_col = skill.reshape(B, 1)
    skill_row = skill.reshape(1, B)

    kernel = functools.partial(_discriminator_kernel,
                               temperature=float(temperature),
                               group=int(group), n_groups=int(G))

    def full(shape):   # whole array as a single block (grid has one step)
        return pl.BlockSpec(shape, lambda i: (0, 0))

    out = pl.pallas_call(
        kernel,
        grid=(1,),
        out_shape=jax.ShapeDtypeStruct((1, 1), jnp.float32),
        in_specs=[
            full((B, S)),            # x (bf16)
            full((S, H)),            # w1
            full((H, H)),            # w2
            full((H, H)),            # w3
            full((H, n)),            # w4
            full((4, H)),            # packed biases
            full((B, 1)),            # skill column
            full((1, B)),            # skill row
        ],
        out_specs=full((1, 1)),
        scratch_shapes=[
            pltpu.VMEM((B, n), jnp.float32),   # normalized features
            pltpu.VMEM((B, 1), jnp.float32),   # per-row positives
        ],
        compiler_params=pltpu.CompilerParams(dimension_semantics=("arbitrary",)),
    )(x_bf, w1b, w2b, w3b, w4b, bias_pack, skill_col, skill_row)

    return out[0, 0]


def _reference_forward(x, skill, params, temperature, group):
    """Pure numpy (float64) reference mirroring the PyTorch code line-by-line."""
    w1, b1, w2, b2, w3, b3, w4, b4 = [np.asarray(p, np.float64) for p in params]
    x = np.asarray(x, np.float64)
    skill = np.asarray(skill)

    h = np.maximum(x @ w1 + b1, 0.0)
    h = np.maximum(h @ w2 + b2, 0.0)
    h = np.maximum(h @ w3 + b3, 0.0)
    f = h @ w4 + b4

    n = f.shape[-1]
    B = f.shape[0]
    fn = f / np.maximum(np.linalg.norm(f, axis=1, keepdims=True), 1e-12)

    lab = (skill[None, :] == skill[:, None]).astype(np.int64)
    sim = fn @ fn.T
    mask = np.eye(B, dtype=bool)
    lab_off = lab[~mask].reshape(B, B - 1)
    sim_off = sim[~mask].reshape(B, B - 1)
    sim_off = sim_off / temperature
    sim_off = sim_off - np.max(sim_off, axis=1, keepdims=True)
    sim_off = np.exp(sim_off)

    group_last = fn.reshape(-1, group, n)[:, group - 1, :]          # [G, n]
    op = np.repeat(group_last, group, axis=0)                        # [B, n]

    positives = np.sum(np.exp(fn * op), axis=-1, keepdims=True)
    negatives = np.sum(sim_off * (1 - lab_off), axis=-1, keepdims=True)
    eps = 1e-6
    loss = -np.log(positives / (negatives + eps) + eps)
    return float(loss.mean())


if __name__ == "__main__":
    # Small shapes consistent with the module: batch must be a multiple of 50.
    GROUP = 50
    B = 2 * GROUP          # 100
    STATE_SIZE = 16
    HIDDEN = 32
    N_SKILLS = 8
    TEMPERATURE = 0.5

    key = jax.random.PRNGKey(0)
    k_x, k_s, k1, k2, k3, k4 = jax.random.split(key, 6)

    x = jax.random.normal(k_x, (B, STATE_SIZE), dtype=jnp.float32)
    skill = jax.random.randint(k_s, (B,), 0, N_SKILLS, dtype=jnp.int32)

    def init_linear(k, fan_in, fan_out):
        kw, kb = jax.random.split(k)
        scale = 1.0 / np.sqrt(fan_in)
        w = jax.random.uniform(kw, (fan_in, fan_out), jnp.float32, -scale, scale)
        b = jax.random.uniform(kb, (1, fan_out), jnp.float32, -scale, scale)
        return w, b

    w1, b1 = init_linear(k1, STATE_SIZE, HIDDEN)
    w2, b2 = init_linear(k2, HIDDEN, HIDDEN)
    w3, b3 = init_linear(k3, HIDDEN, HIDDEN)
    w4, b4 = init_linear(k4, HIDDEN, N_SKILLS)
    params = (w1, b1, w2, b2, w3, b3, w4, b4)

    out = discriminator_forward(x, skill, params,
                                temperature=TEMPERATURE, group=GROUP)
    out = jax.block_until_ready(out)

    ref = _reference_forward(x, skill, params, TEMPERATURE, GROUP)
    assert np.isfinite(float(out)), "kernel produced non-finite loss"
    # Tolerance: MXU operands are bf16, which perturbs the loss by O(1e-2)
    # relative vs. the f64 reference (approx reciprocal adds ~1e-3 on top).
    tol = 3e-2 * (1.0 + abs(ref))
    assert abs(float(out) - ref) < tol, (float(out), ref, tol)

    print("KERNEL_OK")
</pallas_src>

<mosaic_0001>
module attributes {stable_mosaic.version = 11 : i64} {
  func.func @_discriminator_kernel(%arg0: i32, %arg1: memref<100x16xbf16, #tpu.memory_space<vmem>>, %arg2: memref<16x32xbf16, #tpu.memory_space<vmem>>, %arg3: memref<32x32xbf16, #tpu.memory_space<vmem>>, %arg4: memref<32x32xbf16, #tpu.memory_space<vmem>>, %arg5: memref<32x8xbf16, #tpu.memory_space<vmem>>, %arg6: memref<4x32xf32, #tpu.memory_space<vmem>>, %arg7: memref<100x1xi32, #tpu.memory_space<vmem>>, %arg8: memref<1x100xi32, #tpu.memory_space<vmem>>, %arg9: memref<1x1xf32, #tpu.memory_space<vmem>>, %arg10: memref<100x8xf32, #tpu.memory_space<vmem>>, %arg11: memref<100x1xf32, #tpu.memory_space<vmem>>) attributes {dimension_semantics = [#tpu.dimension_semantics<arbitrary>], iteration_bounds = array<i64: 1>, scalar_prefetch = 0 : i64, scratch_operands = 2 : i64, tpu.core_type = #tpu.core_type<tc>, window_params = [{pipeline_mode = #tpu.pipeline_mode<synchronous>, transform_indices = @transform_0, window_bounds = array<i64: 100, 16>}, {pipeline_mode = #tpu.pipeline_mode<synchronous>, transform_indices = @transform_1, window_bounds = array<i64: 16, 32>}, {pipeline_mode = #tpu.pipeline_mode<synchronous>, transform_indices = @transform_2, window_bounds = array<i64: 32, 32>}, {pipeline_mode = #tpu.pipeline_mode<synchronous>, transform_indices = @transform_3, window_bounds = array<i64: 32, 32>}, {pipeline_mode = #tpu.pipeline_mode<synchronous>, transform_indices = @transform_4, window_bounds = array<i64: 32, 8>}, {pipeline_mode = #tpu.pipeline_mode<synchronous>, transform_indices = @transform_5, window_bounds = array<i64: 4, 32>}, {pipeline_mode = #tpu.pipeline_mode<synchronous>, transform_indices = @transform_6, window_bounds = array<i64: 100, 1>}, {pipeline_mode = #tpu.pipeline_mode<synchronous>, transform_indices = @transform_7, window_bounds = array<i64: 1, 100>}, {pipeline_mode = #tpu.pipeline_mode<synchronous>, transform_indices = @transform_8, window_bounds = array<i64: 1, 1>}]} {
    %c0 = arith.constant 0 : index
    %c0_0 = arith.constant 0 : index
    %0 = vector.load %arg6[%c0, %c0_0] : memref<4x32xf32, #tpu.memory_space<vmem>>, vector<1x32xf32>
    %c1 = arith.constant 1 : index
    %c0_1 = arith.constant 0 : index
    %1 = vector.load %arg6[%c1, %c0_1] : memref<4x32xf32, #tpu.memory_space<vmem>>, vector<1x32xf32>
    %c2 = arith.constant 2 : index
    %c0_2 = arith.constant 0 : index
    %2 = vector.load %arg6[%c2, %c0_2] : memref<4x32xf32, #tpu.memory_space<vmem>>, vector<1x32xf32>
    %c3 = arith.constant 3 : index
    %c0_3 = arith.constant 0 : index
    %3 = vector.load %arg6[%c3, %c0_3] : memref<4x32xf32, #tpu.memory_space<vmem>>, vector<1x8xf32>
    %c0_4 = arith.constant 0 : index
    %c0_5 = arith.constant 0 : index
    %4 = vector.load %arg1[%c0_4, %c0_5] : memref<100x16xbf16, #tpu.memory_space<vmem>>, vector<100x16xbf16>
    %c0_6 = arith.constant 0 : index
    %c0_7 = arith.constant 0 : index
    %5 = vector.load %arg2[%c0_6, %c0_7] : memref<16x32xbf16, #tpu.memory_space<vmem>>, vector<16x32xbf16>
    %cst = arith.constant dense<0.000000e+00> : vector<100x32xf32>
    %6 = tpu.matmul %4, %5, %cst {dimension_numbers = #tpu.dot_dimension_numbers<[1], [0], [0], [1], [0, 0, 1, 1], [], []>} : vector<100x16xbf16>, vector<16x32xbf16>, vector<100x32xf32> -> vector<100x32xf32>
    %7 = vector.broadcast %0 : vector<1x32xf32> to vector<100x32xf32>
    %8 = arith.addf %6, %7 : vector<100x32xf32>
    %cst_8 = arith.constant 0.000000e+00 : f32
    %9 = vector.broadcast %cst_8 : f32 to vector<100x32xf32>
    %10 = arith.maximumf %8, %9 : vector<100x32xf32>
    %11 = arith.truncf %10 : vector<100x32xf32> to vector<100x32xbf16>
    %c0_9 = arith.constant 0 : index
    %c0_10 = arith.constant 0 : index
    %12 = vector.load %arg3[%c0_9, %c0_10] : memref<32x32xbf16, #tpu.memory_space<vmem>>, vector<32x32xbf16>
    %cst_11 = arith.constant dense<0.000000e+00> : vector<100x32xf32>
    %13 = tpu.matmul %11, %12, %cst_11 {dimension_numbers = #tpu.dot_dimension_numbers<[1], [0], [0], [1], [0, 0, 1, 1], [], []>} : vector<100x32xbf16>, vector<32x32xbf16>, vector<100x32xf32> -> vector<100x32xf32>
    %14 = vector.broadcast %1 : vector<1x32xf32> to vector<100x32xf32>
    %15 = arith.addf %13, %14 : vector<100x32xf32>
    %cst_12 = arith.constant 0.000000e+00 : f32
    %16 = vector.broadcast %cst_12 : f32 to vector<100x32xf32>
    %17 = arith.maximumf %15, %16 : vector<100x32xf32>
    %18 = arith.truncf %17 : vector<100x32xf32> to vector<100x32xbf16>
    %c0_13 = arith.constant 0 : index
    %c0_14 = arith.constant 0 : index
    %19 = vector.load %arg4[%c0_13, %c0_14] : memref<32x32xbf16, #tpu.memory_space<vmem>>, vector<32x32xbf16>
    %cst_15 = arith.constant dense<0.000000e+00> : vector<100x32xf32>
    %20 = tpu.matmul %18, %19, %cst_15 {dimension_numbers = #tpu.dot_dimension_numbers<[1], [0], [0], [1], [0, 0, 1, 1], [], []>} : vector<100x32xbf16>, vector<32x32xbf16>, vector<100x32xf32> -> vector<100x32xf32>
    %21 = vector.broadcast %2 : vector<1x32xf32> to vector<100x32xf32>
    %22 = arith.addf %20, %21 : vector<100x32xf32>
    %cst_16 = arith.constant 0.000000e+00 : f32
    %23 = vector.broadcast %cst_16 : f32 to vector<100x32xf32>
    %24 = arith.maximumf %22, %23 : vector<100x32xf32>
    %25 = arith.truncf %24 : vector<100x32xf32> to vector<100x32xbf16>
    %c0_17 = arith.constant 0 : index
    %c0_18 = arith.constant 0 : index
    %26 = vector.load %arg5[%c0_17, %c0_18] : memref<32x8xbf16, #tpu.memory_space<vmem>>, vector<32x8xbf16>
    %cst_19 = arith.constant dense<0.000000e+00> : vector<100x8xf32>
    %27 = tpu.matmul %25, %26, %cst_19 {dimension_numbers = #tpu.dot_dimension_numbers<[1], [0], [0], [1], [0, 0, 1, 1], [], []>} : vector<100x32xbf16>, vector<32x8xbf16>, vector<100x8xf32> -> vector<100x8xf32>
    %28 = vector.broadcast %3 : vector<1x8xf32> to vector<100x8xf32>
    %29 = arith.addf %27, %28 : vector<100x8xf32>
    %30 = arith.mulf %29, %29 : vector<100x8xf32>
    %cst_20 = arith.constant dense<0.000000e+00> : vector<100xf32>
    %31 = vector.multi_reduction <add>, %30, %cst_20 [1] : vector<100x8xf32> to vector<100xf32>
    %32 = vector.shape_cast %31 : vector<100xf32> to vector<100x1xf32>
    %cst_21 = arith.constant 1.000000e-24 : f32
    %33 = vector.broadcast %cst_21 : f32 to vector<100x1xf32>
    %34 = arith.maximumf %32, %33 : vector<100x1xf32>
    %35 = math.rsqrt %34 : vector<100x1xf32>
    %36 = vector.broadcast %35 : vector<100x1xf32> to vector<100x8xf32>
    %37 = arith.mulf %29, %36 : vector<100x8xf32>
    %c0_22 = arith.constant 0 : index
    %c0_23 = arith.constant 0 : index
    %38 = vector.load %arg10[%c0_22, %c0_23] : memref<100x8xf32, #tpu.memory_space<vmem>>, vector<100x8xf32>
    tpu.vector_store %arg10[%c0_22, %c0_23], %37 {strides = array<i32>} : memref<100x8xf32, #tpu.memory_space<vmem>>, vector<100x8xf32>,
    %39 = arith.truncf %37 : vector<100x8xf32> to vector<100x8xbf16>
    %cst_24 = arith.constant dense<0.000000e+00> : vector<100x100xf32>
    %40 = tpu.matmul %39, %39, %cst_24 {dimension_numbers = #tpu.dot_dimension_numbers<[1], [1], [0], [0], [0, 0, 1, 0], [], []>} : vector<100x8xbf16>, vector<100x8xbf16>, vector<100x100xf32> -> vector<100x100xf32>
    %cst_25 = arith.constant 2.000000e+00 : f32
    %41 = vector.broadcast %cst_25 : f32 to vector<100x100xf32>
    %42 = arith.mulf %40, %41 : vector<100x100xf32>
    %43 = tpu.iota {dimensions = array<i32: 0>} : vector<100x100xi32>
    %44 = tpu.iota {dimensions = array<i32: 1>} : vector<100x100xi32>
    %45 = arith.cmpi eq, %43, %44 : vector<100x100xi32>
    %cst_26 = arith.constant -1.000000e+30 : f32
    %cst_27 = arith.constant 0.000000e+00 : f32
    %46 = vector.broadcast %cst_26 : f32 to vector<100x100xf32>
    %47 = vector.broadcast %cst_27 : f32 to vector<100x100xf32>
    %48 = arith.select %45, %46, %47 : vector<100x100xi1>, vector<100x100xf32>
    %49 = arith.addf %42, %48 : vector<100x100xf32>
    %cst_28 = arith.constant dense<0xFF800000> : vector<100xf32>
    %50 = vector.multi_reduction <maximumf>, %49, %cst_28 [1] : vector<100x100xf32> to vector<100xf32>
    %51 = vector.shape_cast %50 : vector<100xf32> to vector<100x1xf32>
    %c0_29 = arith.constant 0 : index
    %c0_30 = arith.constant 0 : index
    %52 = vector.load %arg8[%c0_29, %c0_30] : memref<1x100xi32, #tpu.memory_space<vmem>>, vector<1x100xi32>
    %c0_31 = arith.constant 0 : index
    %c0_32 = arith.constant 0 : index
    %53 = vector.load %arg7[%c0_31, %c0_32] : memref<100x1xi32, #tpu.memory_space<vmem>>, vector<100x1xi32>
    %54 = vector.broadcast %52 : vector<1x100xi32> to vector<100x100xi32>
    %55 = vector.broadcast %53 : vector<100x1xi32> to vector<100x100xi32>
    %56 = arith.cmpi eq, %54, %55 : vector<100x100xi32>
    %cst_33 = arith.constant -1.000000e+30 : f32
    %cst_34 = arith.constant 0.000000e+00 : f32
    %57 = vector.broadcast %cst_33 : f32 to vector<100x100xf32>
    %58 = vector.broadcast %cst_34 : f32 to vector<100x100xf32>
    %59 = arith.select %56, %57, %58 : vector<100x100xi1>, vector<100x100xf32>
    %60 = vector.broadcast %51 : vector<100x1xf32> to vector<100x100xf32>
    %61 = arith.subf %42, %60 : vector<100x100xf32>
    %62 = arith.addf %61, %59 : vector<100x100xf32>
    %63 = math.exp %62 : vector<100x100xf32>
    %cst_35 = arith.constant dense<0.000000e+00> : vector<100xf32>
    %64 = vector.multi_reduction <add>, %63, %cst_35 [1] : vector<100x100xf32> to vector<100xf32>
    %65 = vector.shape_cast %64 : vector<100xf32> to vector<100x1xf32>
    %c0_36 = arith.constant 0 : index
    %c0_37 = arith.constant 0 : index
    %66 = vector.load %arg10[%c0_36, %c0_37] : memref<100x8xf32, #tpu.memory_space<vmem>>, vector<50x8xf32>
    %c49 = arith.constant 49 : index
    %c0_38 = arith.constant 0 : index
    %67 = vector.load %arg10[%c49, %c0_38] : memref<100x8xf32, #tpu.memory_space<vmem>>, vector<1x8xf32>
    %68 = vector.broadcast %67 : vector<1x8xf32> to vector<50x8xf32>
    %69 = arith.mulf %66, %68 : vector<50x8xf32>
    %70 = math.exp %69 : vector<50x8xf32>
    %cst_39 = arith.constant dense<0.000000e+00> : vector<50xf32>
    %71 = vector.multi_reduction <add>, %70, %cst_39 [1] : vector<50x8xf32> to vector<50xf32>
    %72 = vector.shape_cast %71 : vector<50xf32> to vector<50x1xf32>
    %c0_40 = arith.constant 0 : index
    %c0_41 = arith.constant 0 : index
    %73 = vector.load %arg11[%c0_40, %c0_41] : memref<100x1xf32, #tpu.memory_space<vmem>>, vector<50x1xf32>
    tpu.vector_store %arg11[%c0_40, %c0_41], %72 {strides = array<i32>} : memref<100x1xf32, #tpu.memory_space<vmem>>, vector<50x1xf32>,
    %c50 = arith.constant 50 : index
    %c0_42 = arith.constant 0 : index
    %74 = vector.load %arg10[%c50, %c0_42] : memref<100x8xf32, #tpu.memory_space<vmem>>, vector<50x8xf32>
    %c99 = arith.constant 99 : index
    %c0_43 = arith.constant 0 : index
    %75 = vector.load %arg10[%c99, %c0_43] : memref<100x8xf32, #tpu.memory_space<vmem>>, vector<1x8xf32>
    %76 = vector.broadcast %75 : vector<1x8xf32> to vector<50x8xf32>
    %77 = arith.mulf %74, %76 : vector<50x8xf32>
    %78 = math.exp %77 : vector<50x8xf32>
    %cst_44 = arith.constant dense<0.000000e+00> : vector<50xf32>
    %79 = vector.multi_reduction <add>, %78, %cst_44 [1] : vector<50x8xf32> to vector<50xf32>
    %80 = vector.shape_cast %79 : vector<50xf32> to vector<50x1xf32>
    %c50_45 = arith.constant 50 : index
    %c0_46 = arith.constant 0 : index
    %81 = vector.load %arg11[%c50_45, %c0_46] : memref<100x1xf32, #tpu.memory_space<vmem>>, vector<50x1xf32>
    tpu.vector_store %arg11[%c50_45, %c0_46], %80 {strides = array<i32>} : memref<100x1xf32, #tpu.memory_space<vmem>>, vector<50x1xf32>,
    %c0_47 = arith.constant 0 : index
    %c0_48 = arith.constant 0 : index
    %82 = vector.load %arg11[%c0_47, %c0_48] : memref<100x1xf32, #tpu.memory_space<vmem>>, vector<100x1xf32>
    %cst_49 = arith.constant 9.99999997E-7 : f32
    %83 = vector.broadcast %cst_49 : f32 to vector<100x1xf32>
    %84 = arith.addf %65, %83 : vector<100x1xf32>
    %85 = tpu.reciprocal %84 {approx = true} : vector<100x1xf32> -> vector<100x1xf32>
    %86 = arith.mulf %82, %85 : vector<100x1xf32>
    %cst_50 = arith.constant 9.99999997E-7 : f32
    %87 = vector.broadcast %cst_50 : f32 to vector<100x1xf32>
    %88 = arith.addf %86, %87 : vector<100x1xf32>
    %89 = math.log %88 : vector<100x1xf32>
    %cst_51 = arith.constant 0.000000e+00 : f32
    %90 = vector.broadcast %cst_51 : f32 to vector<100x1xf32>
    %91 = arith.subf %90, %89 : vector<100x1xf32>
    %92 = vector.shape_cast %91 : vector<100x1xf32> to vector<1x100x1xf32>
    %cst_52 = arith.constant dense<0.000000e+00> : vector<1xf32>
    %93 = vector.multi_reduction <add>, %92, %cst_52 [1, 2] : vector<1x100x1xf32> to vector<1xf32>
    %94 = vector.shape_cast %93 : vector<1xf32> to vector<1x1x1xf32>
    %95 = vector.extract %94[0, 0, 0] : f32 from vector<1x1x1xf32>
    %cst_53 = arith.constant 1.000000e+02 : f32
    %96 = arith.divf %95, %cst_53 : f32
    %97 = vector.broadcast %96 : f32 to vector<1x1xf32>
    %c0_54 = arith.constant 0 : index
    %c0_55 = arith.constant 0 : index
    %98 = vector.load %arg9[%c0_54, %c0_55] : memref<1x1xf32, #tpu.memory_space<vmem>>, vector<1x1xf32>
    tpu.vector_store %arg9[%c0_54, %c0_55], %97 {strides = array<i32>} : memref<1x1xf32, #tpu.memory_space<vmem>>, vector<1x1xf32>,
    return
  }
  func.func @transform_0(%arg0: i32) -> (i32, i32) {
    %c0_i32 = arith.constant 0 : i32
    %c0_i32_0 = arith.constant 0 : i32
    %c0_i32_1 = arith.constant 0 : i32
    return %c0_i32, %c0_i32_0 : i32, i32
  }
  func.func @transform_1(%arg0: i32) -> (i32, i32) {
    %c0_i32 = arith.constant 0 : i32
    %c0_i32_0 = arith.constant 0 : i32
    %c0_i32_1 = arith.constant 0 : i32
    return %c0_i32, %c0_i32_0 : i32, i32
  }
  func.func @transform_2(%arg0: i32) -> (i32, i32) {
    %c0_i32 = arith.constant 0 : i32
    %c0_i32_0 = arith.constant 0 : i32
    %c0_i32_1 = arith.constant 0 : i32
    return %c0_i32, %c0_i32_0 : i32, i32
  }
  func.func @transform_3(%arg0: i32) -> (i32, i32) {
    %c0_i32 = arith.constant 0 : i32
    %c0_i32_0 = arith.constant 0 : i32
    %c0_i32_1 = arith.constant 0 : i32
    return %c0_i32, %c0_i32_0 : i32, i32
  }
  func.func @transform_4(%arg0: i32) -> (i32, i32) {
    %c0_i32 = arith.constant 0 : i32
    %c0_i32_0 = arith.constant 0 : i32
    %c0_i32_1 = arith.constant 0 : i32
    return %c0_i32, %c0_i32_0 : i32, i32
  }
  func.func @transform_5(%arg0: i32) -> (i32, i32) {
    %c0_i32 = arith.constant 0 : i32
    %c0_i32_0 = arith.constant 0 : i32
    %c0_i32_1 = arith.constant 0 : i32
    return %c0_i32, %c0_i32_0 : i32, i32
  }
  func.func @transform_6(%arg0: i32) -> (i32, i32) {
    %c0_i32 = arith.constant 0 : i32
    %c0_i32_0 = arith.constant 0 : i32
    %c0_i32_1 = arith.constant 0 : i32
    return %c0_i32, %c0_i32_0 : i32, i32
  }
  func.func @transform_7(%arg0: i32) -> (i32, i32) {
    %c0_i32 = arith.constant 0 : i32
    %c0_i32_0 = arith.constant 0 : i32
    %c0_i32_1 = arith.constant 0 : i32
    return %c0_i32, %c0_i32_0 : i32, i32
  }
  func.func @transform_8(%arg0: i32) -> (i32, i32) {
    %c0_i32 = arith.constant 0 : i32
    %c0_i32_0 = arith.constant 0 : i32
    %c0_i32_1 = arith.constant 0 : i32
    return %c0_i32, %c0_i32_0 : i32, i32
  }
}

</mosaic_0001>

<bundles_post_ra>
// kernel: tpu_custom_call.1
= control target key start
LH: loop header
LB: loop body
LE: loop exit
PB: predicated region body
PF: predicated region fallthrough
CT: control target
= control target key end

     0   :  { %v1893_v1 = vmov 0.0   ;;  %vm1894_vm0 = vmmov 0   ;;  %vm93_vm1 = vcmask 130048   ;;  %s2577_s0 = inlined_call_operand.vmem [shape: bf16[100,16], index: 0, kind: input, shape index: {}]   ;;  %s2578_s1 = inlined_call_operand.vmem [shape: bf16[16,32], index: 1, kind: input, shape index: {}]   ;;  %s2579_s2 = inlined_call_operand.vmem [shape: bf16[32,32], index: 2, kind: input, shape index: {}]   ;;  %s2580_s3 = inlined_call_operand.vmem [shape: bf16[32,32], index: 3, kind: input, shape index: {}]   ;;  %s2581_s4 = inlined_call_operand.vmem [shape: bf16[32,8], index: 4, kind: input, shape index: {}]   ;;  %s2582_s5 = inlined_call_operand.vmem [shape: f32[4,32], index: 5, kind: input, shape index: {}]   ;;  %s2583_s6 = inlined_call_operand.vmem [shape: s32[100,1], index: 6, kind: input, shape index: {}]   ;;  %s2584_s7 = inlined_call_operand.vmem [shape: s32[1,100], index: 7, kind: input, shape index: {}]   ;;  %s2585_s8 = inlined_call_operand.hbm [shape: f32[1,1], index: 8, kind: output, shape index: {}]  }
   0x1   :  { %v1723_v0 = vld [vmem:[%s2578_s1] sm:$0xff]   ;;  %1545 = vmatprep.subr.bf16.mxu0 %v1893_v1  ;;  %1713 = vmatprep.subr.bf16.mxu1 %v1893_v1  ;;  %v1725_v4 = vld [vmem:[%s2577_s0 + $0x8] sm:$0xff]  }
   0x2   :  { %v1724_v2 = vld [vmem:[%s2577_s0] sm:$0xff]   ;;  %1546 = vmatpush3.bf16.msra.mxu0 %v1723_v0  ;;  %1547 = vmatprep.mubr.msk.bf16.mxu0 %vm1894_vm0, %v1893_v1  ;;  %v1729_v6 = vld [vmem:[%s2577_s0 + $0x28] sm:$0xff]  }
   0x3   :  { %1714 = vmatpush3.bf16.msra.mxu1 %v1723_v0  ;;  %1563 = vmatprep.mubr.msk.bf16.mxu1 %vm1894_vm0, %v1893_v1  ;;  %v1728_v3 = vld [vmem:[%s2577_s0 + $0x20] sm:$0xff]   ;;  %v1732_v7 = vld [vmem:[%s2579_s2 + $0x8] sm:$0xff]  }
   0x4   :  { %1575 = vmatprep.subr.bf16.mxu1 %v1893_v1  ;;  %1607 = vmatprep.subr.bf16.mxu0 %v1893_v1  ;;  %v1731_v5 = vld [vmem:[%s2579_s2] sm:$0xff]  }
   0x5   :  { %1548 = vmatmul.mubr.msk.bf16.vlgmr.msra.gmra.mrb[0].mxu0 %vm93_vm1, %v1724_v2 }
   0x6   :  { %1551 = vmatprep.mubr.msk.bf16.mxu0 %vm1894_vm0, %v1893_v1  ;;  %1564 = vmatmul.mubr.msk.bf16.vlgmr.msra.gmra.mrb[0].mxu1 %vm93_vm1, %v1728_v3 }
   0x7   :  { %1567 = vmatprep.mubr.msk.bf16.mxu1 %vm1894_vm0, %v1893_v1  ;;  %1576 = vmatpush3.bf16.msra.mxu1 %v1731_v5 }
   0x8   :  { %1577 = vmatprep.subr.bf16.mxu1 %v1893_v1 }
   0x9   :  { %13 = vsyncpa [#allocation5], 0  ;;  %v1726_v8 = vld [vmem:[%s2577_s0 + $0x10] sm:$0xff]   ;;  %v1727_v10 = vld [vmem:[%s2577_s0 + $0x18] sm:$0xff]   ;;  %vm243_vm2 = vcmask 261120   ;;  %vm664_vm3 = vcmask 64512  }
   0xa   :  { %v1730_v9 = vld [vmem:[%s2577_s0 + $0x30] ss:$0 sps:$4 sm:$0x33]   ;;  %v1733_v11 = vld [vmem:[%s2580_s3] sm:$0xff]   ;;  %v1734_v12 = vld [vmem:[%s2580_s3 + $0x8] sm:$0xff]   ;;  %vm701_vm4 = vcmask 60416  }
   0xb   :  { %1578 = vmatpush3.bf16.msra.mxu1 %v1732_v7  ;;  %1608 = vmatpush3.bf16.msra.mxu0 %v1733_v11  ;;  %v2014_v13 = vld [vmem:[%s2582_s5] ss:$0 sm:$0xff]  ;;  %vm1207_vm5 = vcmask 58368   ;;  %vm941_vm11 = vcmask 818176  }
   0xc   :  { %1639 = vmatprep.subr.bf16.mxu1 %v1893_v1  ;;  %1609 = vmatprep.subr.bf16.mxu0 %v1893_v1 }
   0xd   :  { %1552 = vmatmul.mubr.msk.bf16.gmra.mrb[4].mxu0 %vm93_vm1, %v1725_v4 }
   0xe   :  { %1555 = vmatprep.mubr.msk.bf16.mxu0 %vm1894_vm0, %v1893_v1  ;;  %1568 = vmatmul.mubr.msk.bf16.gmra.mrb[4].mxu1 %vm93_vm1, %v1729_v6 }
   0xf   :  { %1571 = vmatprep.mubr.msk.bf16.mxu1 %vm1894_vm0, %v1893_v1  ;;  %1610 = vmatpush3.bf16.msra.mxu0 %v1734_v12  ;;  %v1735_v12 = vld [vmem:[%s2581_s4] sm:$0xff]  }
  0x10   :  { %1671 = vmatprep.subr.bf16.mxu0 %v1893_v1 }
  0x15   :  { %1556 = vmatmul.mubr.msk.bf16.gmra.mrb[8].mxu0 %vm93_vm1, %v1726_v8 }
  0x16   :  { %1559 = vmatprep.mubr.msk.bf16.mxu0 %vm1894_vm0, %v1893_v1  ;;  %1572 = vmatmul.mubr.msk.bf16.gmra.mrb[8].mxu1 %vm93_vm1, %v1730_v9 }
  0x17   :  { %1579 = vmatprep.mubr.msk.bf16.mxu1 %vm1894_vm0, %v1893_v1 }
  0x1d   :  { %1560 = vmatmul.mubr.msk.bf16.gmra.mrb[12].mxu0 %vm93_vm1, %v1727_v10 }
  0x1e   :  { %1611 = vmatprep.mubr.msk.bf16.mxu0 %vm1894_vm0, %v1893_v1 }
  0xd8   :  { %v149_v14 = vpop.f32.mrb[0].mxu0 }
  0xd9   :  { %v150_v15 = vadd.f32 %v2014_v13, %v149_v14  ;;  %v1549_v16 = vpop.f32.mrb[1].mxu0  ;;  %v181_v18 = vpop.f32.mrb[0].mxu1  ;;  %v2060_v14 = vld [vmem:[%s2582_s5 + $0x1] ss:$0 sm:$0xff] }
  0xda   :  { %v152_v17 = vpop.f32.mrb[2].mxu0  ;;  %v182_v21 = vadd.f32 %v2014_v13, %v181_v18  ;;  %v1565_v22 = vpop.f32.mrb[1].mxu1 }
  0xdb   :  { %v153_v19 = vadd.f32 %v2014_v13, %v152_v17  ;;  %v1550_v20 = vpop.f32.mrb[3].mxu0  ;;  %v184_v23 = vpop.f32.mrb[2].mxu1  ;;  %v203_v24 = vmax.f32 %v150_v15, 0.0 }
  0xdc   :  { %v211_v26 = vmax.f32 %v182_v21, 0.0  ;;  %v185_v27 = vadd.f32 %v2014_v13, %v184_v23  ;;  %v1566_v28 = vpop.f32.mrb[3].mxu1 }
  0xdd   :  { %v204_v25 = vmax.f32 %v153_v19, 0.0 }
  0xde   :  { %v212_v30 = vmax.f32 %v185_v27, 0.0 }
  0xdf   :  { %v216_v29 = vpack.c.bf16 %v204_v25, %v203_v24 }
  0xe0   :  { %v157_v31 = vpop.f32.mrb[4].mxu0  ;;  %v220_v34 = vpack.c.bf16 %v212_v30, %v211_v26 }
  0xe1   :  { %v158_v32 = vadd.f32 %v2014_v13, %v157_v31  ;;  %v1553_v33 = vpop.f32.mrb[5].mxu0  ;;  %1580 = vmatmul.mubr.msk.bf16.vlgmr.msra.gmra.mrb[12].mxu1 %vm243_vm2, %v216_v29  ;;  %v189_v36 = vpop.f32.mrb[4].mxu1 }
  0xe2   :  { %v160_v35 = vpop.f32.mrb[6].mxu0  ;;  %1583 = vmatprep.mubr.msk.bf16.mxu1 %vm1894_vm0, %v1893_v1  ;;  %v190_v39 = vadd.f32 %v2014_v13, %v189_v36  ;;  %v1569_v40 = vpop.f32.mrb[5].mxu1  ;;  %1640 = vmatpush3.bf16.msra.mxu1 %v1735_v12 }
  0xe3   :  { %v161_v37 = vadd.f32 %v2014_v13, %v160_v35  ;;  %v1554_v38 = vpop.f32.mrb[7].mxu0  ;;  %v192_v41 = vpop.f32.mrb[6].mxu1  ;;  %v205_v42 = vmax.f32 %v158_v32, 0.0  ;;  %1641 = vmatprep.subr.bf16.mxu1 %v1893_v1 }
  0xe4   :  { %v213_v44 = vmax.f32 %v190_v39, 0.0  ;;  %v193_v45 = vadd.f32 %v2014_v13, %v192_v41  ;;  %v1570_v46 = vpop.f32.mrb[7].mxu1 }
  0xe5   :  { %v206_v43 = vmax.f32 %v161_v37, 0.0 }
  0xe6   :  { %v214_v48 = vmax.f32 %v193_v45, 0.0 }
  0xe7   :  { %v217_v47 = vpack.c.bf16 %v206_v43, %v205_v42 }
  0xe8   :  { %v165_v49 = vpop.f32.mrb[8].mxu0  ;;  %v221_v52 = vpack.c.bf16 %v214_v48, %v213_v44 }
  0xe9   :  { %v166_v50 = vadd.f32 %v2014_v13, %v165_v49  ;;  %v1557_v51 = vpop.f32.mrb[9].mxu0  ;;  %1584 = vmatmul.mubr.msk.bf16.gmra.mrb[16].mxu1 %vm243_vm2, %v217_v47  ;;  %v197_v54 = vpop.f32.mrb[8].mxu1 }
  0xea   :  { %v168_v53 = vpop.f32.mrb[10].mxu0  ;;  %1587 = vmatprep.mubr.msk.bf16.mxu1 %vm1894_vm0, %v1893_v1  ;;  %v1573_v58 = vpop.f32.mrb[9].mxu1  ;;  %v198_v9 = vadd.f32 %v2014_v13, %v197_v54 }
  0xeb   :  { %v207_v55 = vmax.f32 %v166_v50, 0.0  ;;  %v169_v56 = vadd.f32 %v2014_v13, %v168_v53  ;;  %v1558_v57 = vpop.f32.mrb[11].mxu0  ;;  %v200_v59 = vpop.f32.mrb[10].mxu1 }
  0xec   :  { %v1574_v61 = vpop.f32.mrb[11].mxu1  ;;  %v215_v10 = vmax.f32 %v198_v9, 0.0 }
  0xed   :  { %v208_v60 = vmax.f32 %v169_v56, 0.0 }
  0xee   :  { %v222_v11 = vpack.c.bf16 %v215_v10, %v215_v10 }
  0xef   :  { %v218_v62 = vpack.c.bf16 %v208_v60, %v207_v55 }
  0xf0   :  { %v173_v63 = vpop.f32.mrb[12].mxu0 }
  0xf1   :  { %v174_v0 = vadd.f32 %v2014_v13, %v173_v63  ;;  %v1561_v2 = vpop.f32.mrb[13].mxu0  ;;  %1588 = vmatmul.mubr.msk.bf16.gmra.mrb[20].mxu1 %vm243_vm2, %v218_v62 }
  0xf2   :  { %v176_v3 = vpop.f32.mrb[14].mxu0  ;;  %1591 = vmatprep.mubr.msk.bf16.mxu1 %vm1894_vm0, %v1893_v1 }
  0xf3   :  { %v209_v4 = vmax.f32 %v174_v0, 0.0  ;;  %v177_v5 = vadd.f32 %v2014_v13, %v176_v3  ;;  %v1562_v6 = vpop.f32.mrb[15].mxu0  ;;  %v1736_v13 = vld [vmem:[%s2581_s4 + $0x8] sm:$0xff]  }
  0xf4   :  { %1642 = vmatpush3.bf16.msra.mxu1 %v1736_v13  ;;  %v2099_v13 = vld [vmem:[%s2582_s5 + $0x2] ss:$0 sm:$0xff] }
  0xf5   :  { %v210_v7 = vmax.f32 %v177_v5, 0.0 }
  0xf7   :  { %v219_v8 = vpack.c.bf16 %v210_v7, %v209_v4 }
  0xf9   :  { %1592 = vmatmul.mubr.msk.bf16.gmra.mrb[24].mxu1 %vm243_vm2, %v219_v8 }
  0xfa   :  { %1595 = vmatprep.mubr.msk.bf16.mxu1 %vm1894_vm0, %v1893_v1 }
 0x101   :  { %1596 = vmatmul.mubr.msk.bf16.gmra.mrb[28].mxu1 %vm243_vm2, %v220_v34 }
 0x102   :  { %1599 = vmatprep.mubr.msk.bf16.mxu1 %vm1894_vm0, %v1893_v1 }
 0x109   :  { %1600 = vmatmul.mubr.msk.bf16.gmra.mrb[32].mxu1 %vm243_vm2, %v221_v52 }
 0x10a   :  { %1603 = vmatprep.mubr.msk.bf16.mxu1 %vm1894_vm0, %v1893_v1 }
 0x111   :  { %1604 = vmatmul.mubr.msk.bf16.gmra.mrb[36].mxu1 %vm243_vm2, %v222_v11 }
 0x112   :  { %1643 = vmatprep.mubr.msk.bf16.mxu1 %vm1894_vm0, %v1893_v1 }
 0x1b4   :  { %v299_v15 = vpop.f32.mrb[12].mxu1 }
 0x1b5   :  { %v300_v16 = vadd.f32 %v2060_v14, %v299_v15  ;;  %v1581_v17 = vpop.f32.mrb[13].mxu1 }
 0x1b6   :  { %v302_v18 = vpop.f32.mrb[14].mxu1 }
 0x1b7   :  { %v303_v19 = vadd.f32 %v2060_v14, %v302_v18  ;;  %v1582_v20 = vpop.f32.mrb[15].mxu1  ;;  %v353_v21 = vmax.f32 %v300_v16, 0.0 }
 0x1b9   :  { %v354_v22 = vmax.f32 %v303_v19, 0.0 }
 0x1bb   :  { %v366_v23 = vpack.c.bf16 %v354_v22, %v353_v21 }
 0x1bc   :  { %v307_v24 = vpop.f32.mrb[16].mxu1 }
 0x1bd   :  { %v308_v25 = vadd.f32 %v2060_v14, %v307_v24  ;;  %v1585_v26 = vpop.f32.mrb[17].mxu1  ;;  %1612 = vmatmul.mubr.msk.bf16.vlgmr.msra.gmra.mrb[16].mxu0 %vm243_vm2, %v366_v23 }
 0x1be   :  { %v310_v27 = vpop.f32.mrb[18].mxu1  ;;  %1615 = vmatprep.mubr.msk.bf16.mxu0 %vm1894_vm0, %v1893_v1 }
 0x1bf   :  { %v311_v28 = vadd.f32 %v2060_v14, %v310_v27  ;;  %v1586_v29 = vpop.f32.mrb[19].mxu1  ;;  %v355_v30 = vmax.f32 %v308_v25, 0.0 }
 0x1c1   :  { %v356_v31 = vmax.f32 %v311_v28, 0.0 }
 0x1c3   :  { %v367_v32 = vpack.c.bf16 %v356_v31, %v355_v30 }
 0x1c4   :  { %v315_v33 = vpop.f32.mrb[20].mxu1 }
 0x1c5   :  { %v316_v34 = vadd.f32 %v2060_v14, %v315_v33  ;;  %v1589_v35 = vpop.f32.mrb[21].mxu1  ;;  %1616 = vmatmul.mubr.msk.bf16.gmra.mrb[20].mxu0 %vm243_vm2, %v367_v32 }
 0x1c6   :  { %v318_v36 = vpop.f32.mrb[22].mxu1  ;;  %1619 = vmatprep.mubr.msk.bf16.mxu0 %vm1894_vm0, %v1893_v1 }
 0x1c7   :  { %v319_v37 = vadd.f32 %v2060_v14, %v318_v36  ;;  %v1590_v38 = vpop.f32.mrb[23].mxu1  ;;  %v357_v39 = vmax.f32 %v316_v34, 0.0 }
 0x1c9   :  { %v358_v40 = vmax.f32 %v319_v37, 0.0 }
 0x1cb   :  { %v368_v41 = vpack.c.bf16 %v358_v40, %v357_v39 }
 0x1cc   :  { %v323_v42 = vpop.f32.mrb[24].mxu1 }
 0x1cd   :  { %v324_v43 = vadd.f32 %v2060_v14, %v323_v42  ;;  %v1593_v44 = vpop.f32.mrb[25].mxu1  ;;  %1620 = vmatmul.mubr.msk.bf16.gmra.mrb[24].mxu0 %vm243_vm2, %v368_v41 }
 0x1ce   :  { %v326_v45 = vpop.f32.mrb[26].mxu1  ;;  %1623 = vmatprep.mubr.msk.bf16.mxu0 %vm1894_vm0, %v1893_v1 }
 0x1cf   :  { %v327_v46 = vadd.f32 %v2060_v14, %v326_v45  ;;  %v1594_v47 = vpop.f32.mrb[27].mxu1  ;;  %v359_v48 = vmax.f32 %v324_v43, 0.0 }
 0x1d1   :  { %v360_v49 = vmax.f32 %v327_v46, 0.0 }
 0x1d3   :  { %v369_v50 = vpack.c.bf16 %v360_v49, %v359_v48 }
 0x1d4   :  { %v331_v51 = vpop.f32.mrb[28].mxu1 }
 0x1d5   :  { %v332_v52 = vadd.f32 %v2060_v14, %v331_v51  ;;  %v1597_v53 = vpop.f32.mrb[29].mxu1  ;;  %1624 = vmatmul.mubr.msk.bf16.gmra.mrb[28].mxu0 %vm243_vm2, %v369_v50 }
 0x1d6   :  { %v334_v54 = vpop.f32.mrb[30].mxu1  ;;  %1627 = vmatprep.mubr.msk.bf16.mxu0 %vm1894_vm0, %v1893_v1 }
 0x1d7   :  { %v335_v55 = vadd.f32 %v2060_v14, %v334_v54  ;;  %v1598_v56 = vpop.f32.mrb[31].mxu1  ;;  %v361_v57 = vmax.f32 %v332_v52, 0.0 }
 0x1d9   :  { %v362_v58 = vmax.f32 %v335_v55, 0.0 }
 0x1db   :  { %v370_v59 = vpack.c.bf16 %v362_v58, %v361_v57 }
 0x1dc   :  { %v339_v60 = vpop.f32.mrb[32].mxu1 }
 0x1dd   :  { %v340_v61 = vadd.f32 %v2060_v14, %v339_v60  ;;  %v1601_v62 = vpop.f32.mrb[33].mxu1  ;;  %1628 = vmatmul.mubr.msk.bf16.gmra.mrb[32].mxu0 %vm243_vm2, %v370_v59 }
 0x1de   :  { %v342_v63 = vpop.f32.mrb[34].mxu1  ;;  %1631 = vmatprep.mubr.msk.bf16.mxu0 %vm1894_vm0, %v1893_v1 }
 0x1df   :  { %v343_v0 = vadd.f32 %v2060_v14, %v342_v63  ;;  %v1602_v2 = vpop.f32.mrb[35].mxu1  ;;  %v363_v3 = vmax.f32 %v340_v61, 0.0 }
 0x1e1   :  { %v364_v4 = vmax.f32 %v343_v0, 0.0 }
 0x1e3   :  { %v371_v5 = vpack.c.bf16 %v364_v4, %v363_v3 }
 0x1e4   :  { %v347_v6 = vpop.f32.mrb[36].mxu1 }
 0x1e5   :  { %1632 = vmatmul.mubr.msk.bf16.gmra.mrb[36].mxu0 %vm243_vm2, %v371_v5  ;;  %v348_v7 = vadd.f32 %v2060_v14, %v347_v6  ;;  %v1605_v8 = vpop.f32.mrb[37].mxu1 }
 0x1e6   :  { %v350_v9 = vpop.f32.mrb[38].mxu1  ;;  %1635 = vmatprep.mubr.msk.bf16.mxu0 %vm1894_vm0, %v1893_v1 }
 0x1e7   :  { %v365_v10 = vmax.f32 %v348_v7, 0.0  ;;  %v1606_v11 = vpop.f32.mrb[39].mxu1 }
 0x1e9   :  { %v372_v12 = vpack.c.bf16 %v365_v10, %v365_v10 }
 0x1ed   :  { %1636 = vmatmul.mubr.msk.bf16.gmra.mrb[40].mxu0 %vm243_vm2, %v372_v12  ;;  %v2136_v12 = vld [vmem:[%s2582_s5 + $0x3] ss:$0 sm:$0xff] }
 0x1ee   :  { %1685 = vmatprep.mubr.msk.bf16.mxu0 %vm1894_vm0, %v1893_v1 }
 0x290   :  { %v448_v15 = vpop.f32.mrb[16].mxu0 }
 0x291   :  { %v449_v14 = vadd.f32 %v2099_v13, %v448_v15  ;;  %v1613_v16 = vpop.f32.mrb[17].mxu0 }
 0x292   :  { %v451_v17 = vpop.f32.mrb[18].mxu0 }
 0x293   :  { %v452_v18 = vadd.f32 %v2099_v13, %v451_v17  ;;  %v1614_v19 = vpop.f32.mrb[19].mxu0  ;;  %v502_v20 = vmax.f32 %v449_v14, 0.0 }
 0x295   :  { %v503_v21 = vmax.f32 %v452_v18, 0.0 }
 0x297   :  { %v515_v22 = vpack.c.bf16 %v503_v21, %v502_v20 }
 0x298   :  { %v456_v23 = vpop.f32.mrb[20].mxu0 }
 0x299   :  { %v457_v24 = vadd.f32 %v2099_v13, %v456_v23  ;;  %v1617_v25 = vpop.f32.mrb[21].mxu0  ;;  %1644 = vmatmul.mubr.msk.bf16.vlgmr.msra.gmra.mrb[40].mxu1 %vm243_vm2, %v515_v22 }
 0x29a   :  { %v459_v26 = vpop.f32.mrb[22].mxu0  ;;  %1647 = vmatprep.mubr.msk.bf16.mxu1 %vm1894_vm0, %v1893_v1 }
 0x29b   :  { %v460_v27 = vadd.f32 %v2099_v13, %v459_v26  ;;  %v1618_v28 = vpop.f32.mrb[23].mxu0  ;;  %v504_v29 = vmax.f32 %v457_v24, 0.0 }
 0x29d   :  { %v505_v30 = vmax.f32 %v460_v27, 0.0 }
 0x29f   :  { %v516_v31 = vpack.c.bf16 %v505_v30, %v504_v29 }
 0x2a0   :  { %v464_v32 = vpop.f32.mrb[24].mxu0 }
 0x2a1   :  { %v465_v33 = vadd.f32 %v2099_v13, %v464_v32  ;;  %v1621_v34 = vpop.f32.mrb[25].mxu0  ;;  %1648 = vmatmul.mubr.msk.bf16.gmra.mrb[44].mxu1 %vm243_vm2, %v516_v31 }
 0x2a2   :  { %v467_v35 = vpop.f32.mrb[26].mxu0  ;;  %1651 = vmatprep.mubr.msk.bf16.mxu1 %vm1894_vm0, %v1893_v1 }
 0x2a3   :  { %v468_v36 = vadd.f32 %v2099_v13, %v467_v35  ;;  %v1622_v37 = vpop.f32.mrb[27].mxu0  ;;  %v506_v38 = vmax.f32 %v465_v33, 0.0 }
 0x2a5   :  { %v507_v39 = vmax.f32 %v468_v36, 0.0 }
 0x2a7   :  { %v517_v40 = vpack.c.bf16 %v507_v39, %v506_v38 }
 0x2a8   :  { %v472_v41 = vpop.f32.mrb[28].mxu0 }
 0x2a9   :  { %v473_v42 = vadd.f32 %v2099_v13, %v472_v41  ;;  %v1625_v43 = vpop.f32.mrb[29].mxu0  ;;  %1652 = vmatmul.mubr.msk.bf16.gmra.mrb[48].mxu1 %vm243_vm2, %v517_v40 }
 0x2aa   :  { %v475_v44 = vpop.f32.mrb[30].mxu0  ;;  %1655 = vmatprep.mubr.msk.bf16.mxu1 %vm1894_vm0, %v1893_v1 }
 0x2ab   :  { %v476_v45 = vadd.f32 %v2099_v13, %v475_v44  ;;  %v1626_v46 = vpop.f32.mrb[31].mxu0  ;;  %v508_v47 = vmax.f32 %v473_v42, 0.0 }
 0x2ad   :  { %v509_v48 = vmax.f32 %v476_v45, 0.0 }
 0x2af   :  { %v518_v49 = vpack.c.bf16 %v509_v48, %v508_v47 }
 0x2b0   :  { %v480_v50 = vpop.f32.mrb[32].mxu0 }
 0x2b1   :  { %v481_v51 = vadd.f32 %v2099_v13, %v480_v50  ;;  %v1629_v52 = vpop.f32.mrb[33].mxu0  ;;  %1656 = vmatmul.mubr.msk.bf16.gmra.mrb[52].mxu1 %vm243_vm2, %v518_v49 }
 0x2b2   :  { %v483_v53 = vpop.f32.mrb[34].mxu0  ;;  %1659 = vmatprep.mubr.msk.bf16.mxu1 %vm1894_vm0, %v1893_v1 }
 0x2b3   :  { %v484_v54 = vadd.f32 %v2099_v13, %v483_v53  ;;  %v1630_v55 = vpop.f32.mrb[35].mxu0  ;;  %v510_v56 = vmax.f32 %v481_v51, 0.0 }
 0x2b5   :  { %v511_v57 = vmax.f32 %v484_v54, 0.0 }
 0x2b7   :  { %v519_v58 = vpack.c.bf16 %v511_v57, %v510_v56 }
 0x2b8   :  { %v488_v59 = vpop.f32.mrb[36].mxu0 }
 0x2b9   :  { %v489_v60 = vadd.f32 %v2099_v13, %v488_v59  ;;  %v1633_v61 = vpop.f32.mrb[37].mxu0  ;;  %1660 = vmatmul.mubr.msk.bf16.gmra.mrb[56].mxu1 %vm243_vm2, %v519_v58 }
 0x2ba   :  { %v491_v62 = vpop.f32.mrb[38].mxu0  ;;  %1663 = vmatprep.mubr.msk.bf16.mxu1 %vm1894_vm0, %v1893_v1 }
 0x2bb   :  { %v492_v63 = vadd.f32 %v2099_v13, %v491_v62  ;;  %v1634_v0 = vpop.f32.mrb[39].mxu0  ;;  %v512_v2 = vmax.f32 %v489_v60, 0.0 }
 0x2bd   :  { %v513_v3 = vmax.f32 %v492_v63, 0.0 }
 0x2bf   :  { %v520_v4 = vpack.c.bf16 %v513_v3, %v512_v2 }
 0x2c0   :  { %v496_v5 = vpop.f32.mrb[40].mxu0 }
 0x2c1   :  { %1664 = vmatmul.mubr.msk.bf16.gmra.mrb[60].mxu1 %vm243_vm2, %v520_v4  ;;  %v497_v6 = vadd.f32 %v2099_v13, %v496_v5  ;;  %v1637_v7 = vpop.f32.mrb[41].mxu0 }
 0x2c2   :  { %v499_v8 = vpop.f32.mrb[42].mxu0  ;;  %1667 = vmatprep.mubr.msk.bf16.mxu1 %vm1894_vm0, %v1893_v1 }
 0x2c3   :  { %v514_v9 = vmax.f32 %v497_v6, 0.0  ;;  %v1638_v10 = vpop.f32.mrb[43].mxu0 }
 0x2c5   :  { %v521_v11 = vpack.c.bf16 %v514_v9, %v514_v9 }
 0x2c9   :  { %1668 = vmatmul.mubr.msk.bf16.gmra.mrb[64].mxu1 %vm243_vm2, %v521_v11 }
 0x36c   :  { %v597_v15 = vpop.f32.mrb[40].mxu1 }
 0x36d   :  { %v2139_v14 = vadd.f32 %v2136_v12, %v597_v15  ;;  %v1645_v13 = vpop.f32.mrb[41].mxu1 }
 0x36e   :  { %v600_v16 = vpop.f32.mrb[42].mxu1 }
 0x36f   :  { %v2142_v17 = vadd.f32 %v2136_v12, %v600_v16  ;;  %v1646_v18 = vpop.f32.mrb[43].mxu1  ;;  %v651_v19 = vmul.f32 %v2139_v14, %v2139_v14 }
 0x371   :  { %v665_v20 = vsel %vm664_vm3, %v651_v19, 0.0  ;;  %v652_v21 = vmul.f32 %v2142_v17, %v2142_v17 }
 0x372   :  { %666 = vadd.xlane.f32.xlu0 %v665_v20  ;;  %v984_v20 = vld [vmem:[%s2583_s6 + $0x8] sm:$0xff] }
 0x373   :  { %v668_v25 = vsel %vm664_vm3, %v652_v21, 0.0  ;;  %v983_v21 = vld [vmem:[%s2583_s6] sm:$0xff] }
 0x374   :  { %v605_v22 = vpop.f32.mrb[44].mxu1 }
 0x375   :  { %v2150_v23 = vadd.f32 %v2136_v12, %v605_v22  ;;  %v1649_v24 = vpop.f32.mrb[45].mxu1 }
 0x376   :  { %669 = vadd.xlane.f32.xlu0 %v668_v25  ;;  %v608_v26 = vpop.f32.mrb[46].mxu1  ;;  %v986_v25 = vld [vmem:[%s2583_s6 + $0x18] sm:$0xff] }
 0x377   :  { %v2154_v27 = vadd.f32 %v2136_v12, %v608_v26  ;;  %v1650_v28 = vpop.f32.mrb[47].mxu1  ;;  %v653_v29 = vmul.f32 %v2150_v23, %v2150_v23  ;;  %v985_v26 = vld [vmem:[%s2583_s6 + $0x10] sm:$0xff] }
 0x379   :  { %v671_v30 = vsel %vm664_vm3, %v653_v29, 0.0  ;;  %v654_v31 = vmul.f32 %v2154_v27, %v2154_v27 }
 0x37a   :  { %672 = vadd.xlane.f32.xlu1 %v671_v30  ;;  %v988_v30 = vld [vmem:[%s2583_s6 + $0x28] sm:$0xff] }
 0x37b   :  { %v674_v35 = vsel %vm664_vm3, %v654_v31, 0.0  ;;  %v987_v31 = vld [vmem:[%s2583_s6 + $0x20] sm:$0xff] }
 0x37c   :  { %v613_v32 = vpop.f32.mrb[48].mxu1 }
 0x37d   :  { %v2162_v33 = vadd.f32 %v2136_v12, %v613_v32  ;;  %v1653_v34 = vpop.f32.mrb[49].mxu1 }
 0x37e   :  { %675 = vadd.xlane.f32.xlu1 %v674_v35  ;;  %v616_v36 = vpop.f32.mrb[50].mxu1  ;;  %v990_v35 = vld [vmem:[%s2583_s6 + $0x38] sm:$0xff] }
 0x37f   :  { %v2166_v37 = vadd.f32 %v2136_v12, %v616_v36  ;;  %v1654_v38 = vpop.f32.mrb[51].mxu1  ;;  %v655_v39 = vmul.f32 %v2162_v33, %v2162_v33  ;;  %v989_v36 = vld [vmem:[%s2583_s6 + $0x30] sm:$0xff] }
 0x381   :  { %v677_v40 = vsel %vm664_vm3, %v655_v39, 0.0  ;;  %v656_v41 = vmul.f32 %v2166_v37, %v2166_v37 }
 0x382   :  { %678 = vadd.xlane.f32.xlu0 %v677_v40 }
 0x383   :  { %v680_v42 = vsel %vm664_vm3, %v656_v41, 0.0 }
 0x384   :  { %681 = vadd.xlane.f32.xlu1 %v680_v42  ;;  %v621_v43 = vpop.f32.mrb[52].mxu1 }
 0x385   :  { %v2175_v44 = vadd.f32 %v2136_v12, %v621_v43  ;;  %v1657_v45 = vpop.f32.mrb[53].mxu1 }
 0x386   :  { %v624_v46 = vpop.f32.mrb[54].mxu1 }
 0x387   :  { %v2178_v47 = vadd.f32 %v2136_v12, %v624_v46  ;;  %v1658_v48 = vpop.f32.mrb[55].mxu1  ;;  %v657_v49 = vmul.f32 %v2175_v44, %v2175_v44 }
 0x389   :  { %v683_v50 = vsel %vm664_vm3, %v657_v49, 0.0  ;;  %v658_v51 = vmul.f32 %v2178_v47, %v2178_v47 }
 0x38a   :  { %684 = vadd.xlane.f32.xlu0 %v683_v50 }
 0x38b   :  { %v686_v52 = vsel %vm664_vm3, %v658_v51, 0.0 }
 0x38c   :  { %687 = vadd.xlane.f32.xlu1 %v686_v52  ;;  %v629_v53 = vpop.f32.mrb[56].mxu1 }
 0x38d   :  { %v2187_v54 = vadd.f32 %v2136_v12, %v629_v53  ;;  %v1661_v55 = vpop.f32.mrb[57].mxu1 }
 0x38e   :  { %v632_v56 = vpop.f32.mrb[58].mxu1 }
 0x38f   :  { %v2190_v57 = vadd.f32 %v2136_v12, %v632_v56  ;;  %v1662_v58 = vpop.f32.mrb[59].mxu1  ;;  %v659_v59 = vmul.f32 %v2187_v54, %v2187_v54 }
 0x391   :  { %v689_v60 = vsel %vm664_vm3, %v659_v59, 0.0  ;;  %v660_v61 = vmul.f32 %v2190_v57, %v2190_v57 }
 0x392   :  { %690 = vadd.xlane.f32.xlu0 %v689_v60 }
 0x393   :  { %v692_v62 = vsel %vm664_vm3, %v660_v61, 0.0 }
 0x394   :  { %693 = vadd.xlane.f32.xlu1 %v692_v62  ;;  %v637_v63 = vpop.f32.mrb[60].mxu1 }
 0x395   :  { %v2199_v0 = vadd.f32 %v2136_v12, %v637_v63  ;;  %v1665_v2 = vpop.f32.mrb[61].mxu1 }
 0x396   :  { %v640_v3 = vpop.f32.mrb[62].mxu1 }
 0x397   :  { %v2202_v4 = vadd.f32 %v2136_v12, %v640_v3  ;;  %v1666_v5 = vpop.f32.mrb[63].mxu1  ;;  %v661_v6 = vmul.f32 %v2199_v0, %v2199_v0 }
 0x399   :  { %v695_v7 = vsel %vm664_vm3, %v661_v6, 0.0  ;;  %v662_v8 = vmul.f32 %v2202_v4, %v2202_v4 }
 0x39a   :  { %696 = vadd.xlane.f32.xlu0 %v695_v7 }
 0x39b   :  { %v698_v9 = vsel %vm664_vm3, %v662_v8, 0.0 }
 0x39c   :  { %699 = vadd.xlane.f32.xlu1 %v698_v9  ;;  %v645_v10 = vpop.f32.mrb[64].mxu1 }
 0x39d   :  { %v2211_v11 = vadd.f32 %v2136_v12, %v645_v10  ;;  %v1669_v15 = vpop.f32.mrb[65].mxu1  ;;  %v1895_v12 = vmov 0  }
 0x39e   :  { %v648_v13 = vpop.f32.mrb[66].mxu1  ;;  %1722 = vset.pattern.permute.xlu1 %v1895_v12  ;;  %1721 = vset.pattern.permute.xlu0 %v1895_v12 }
 0x39f   :  { %v1670_v16 = vpop.f32.mrb[67].mxu1  ;;  %v663_v18 = vmul.f32 %v2211_v11, %v2211_v11 }
 0x3a1   :  { %v702_v19 = vsel %vm701_vm4, %v663_v18, 0.0 }
 0x3a2   :  { %703 = vadd.xlane.f32.xlu0 %v702_v19 }
 0x3ad   :  { %1004 = vperm.xlu1 %1722, %v984_v20  }
 0x3b1   :  { %1010 = vperm.xlu1 %1722, %v986_v25  }
 0x3b5   :  { %1016 = vperm.xlu1 %1722, %v988_v30  }
 0x3b8   :  { %1001 = vperm.xlu0 %1721, %v983_v21  }
 0x3b9   :  { %1022 = vperm.xlu1 %1722, %v990_v35  }
 0x3bc   :  { %1007 = vperm.xlu0 %1721, %v985_v26  }
 0x3c0   :  { %1013 = vperm.xlu0 %1721, %v987_v31  }
 0x3c4   :  { %1019 = vperm.xlu0 %1721, %v989_v36  }
 0x3ff   :  { %v667_v22 = vpop.xlane.xlu0 %666 }
 0x400   :  { %v705_v24 = vmax.f32 %v667_v22, 1e-24 }
 0x402   :  { %1737 = vrsqrt.f32 %v705_v24 }
 0x403   :  { %v670_v28 = vpop.xlane.xlu0 %669 }
 0x404   :  { %v706_v29 = vmax.f32 %v670_v28, 1e-24 }
 0x406   :  { %1739 = vrsqrt.f32 %v706_v29 }
 0x407   :  { %v673_v32 = vpop.xlane.xlu1 %672 }
 0x408   :  { %v707_v34 = vmax.f32 %v673_v32, 1e-24 }
 0x40a   :  { %1741 = vrsqrt.f32 %v707_v34 }
 0x40b   :  { %v676_v38 = vpop.xlane.xlu1 %675 }
 0x40c   :  { %v1738_v39 = vpop.eup %1737  ;;  %v708_v40 = vmax.f32 %v676_v38, 1e-24 }
 0x40d   :  { %v731_v41 = vmul.f32 %v1738_v39, %v2139_v14 }
 0x40e   :  { %1743 = vrsqrt.f32 %v708_v40 }
 0x40f   :  { %v679_v42 = vpop.xlane.xlu0 %678  ;;  %744 = vst.msk [vmem:[#allocation2] sm:$0xff] %vm664_vm3, %v731_v41 }
 0x410   :  { %v1740_v43 = vpop.eup %1739  ;;  %v709_v45 = vmax.f32 %v679_v42, 1e-24 }
 0x411   :  { %v682_v46 = vpop.xlane.xlu1 %681  ;;  %v732_v48 = vmul.f32 %v1740_v43, %v2142_v17 }
 0x412   :  { %1745 = vrsqrt.f32 %v709_v45  ;;  %v710_v49 = vmax.f32 %v682_v46, 1e-24 }
 0x413   :  { %745 = vst.msk [vmem:[#allocation2 + $0x8] sm:$0xff] %vm664_vm3, %v732_v48  ;;  %v2244_v50 = vpack.c.bf16 %v732_v48, %v731_v41  ;;  %v886_v41 = vlaneseq }
 0x414   :  { %v1742_v51 = vpop.eup %1741  ;;  %1747 = vrsqrt.f32 %v710_v49 }
 0x415   :  { %v765_v14 = vsel %vm664_vm3, %v2244_v50, 0  ;;  %v733_v52 = vmul.f32 %v1742_v51, %v2150_v23  ;;  %v2316_v42 = vshrl.u32 %v886_v41, 7  ;;  %v2318_v43 = vand.u32 127, %v886_v41 }
 0x416   :  { %1672 = vmatpush3.bf16.xpose.msra.mxu0 %v765_v14 }
 0x417   :  { %v685_v53 = vpop.xlane.xlu0 %684  ;;  %1673 = vmatprep.subr.bf16.mxu0 %v1893_v1  ;;  %746 = vst.msk [vmem:[#allocation2 + $0x10] sm:$0xff] %vm664_vm3, %v733_v52  ;;  %v2321_v45 = vadd.s32 64, %v2316_v42  ;;  %v2326_v46 = vadd.s32 80, %v2316_v42  ;;  %v2331_v48 = vadd.s32 96, %v2316_v42  ;;  %v888_v49 = vadd.s32 8, %v2316_v42 }
 0x418   :  { %v1744_v17 = vpop.eup %1743  ;;  %v711_v55 = vmax.f32 %v685_v53, 1e-24  ;;  %vm902_vm9 = vcmp.eq.s32.totalorder %v2316_v42, %v2318_v43  ;;  %v889_v53 = vadd.s32 16, %v2316_v42 }
 0x419   :  { %v688_v56 = vpop.xlane.xlu1 %687  ;;  %v734_v58 = vmul.f32 %v1744_v17, %v2154_v27  ;;  %vm910_vm6 = vcmp.eq.s32.totalorder %v2321_v45, %v2318_v43  ;;  %vm912_vm7 = vcmp.eq.s32.totalorder %v2326_v46, %v2318_v43  ;;  %vm914_vm8 = vcmp.eq.s32.totalorder %v2331_v48, %v2318_v43 }
 0x41a   :  { %1749 = vrsqrt.f32 %v711_v55  ;;  %v712_v59 = vmax.f32 %v688_v56, 1e-24  ;;  %vm903_vm10 = vcmp.eq.s32.totalorder %v888_v49, %v2318_v43  ;;  %v915_v51 = vsel %vm902_vm9, -1e+30, %v1893_v1 }
 0x41b   :  { %747 = vst.msk [vmem:[#allocation2 + $0x18] sm:$0xff] %vm664_vm3, %v734_v58  ;;  %v2253_v60 = vpack.c.bf16 %v734_v58, %v733_v52  ;;  %v916_v55 = vsel %vm903_vm10, -1e+30, %v1893_v1  ;;  %vm904_vm12 = vcmp.eq.s32.totalorder %v889_v53, %v2318_v43  ;;  %v925_v45 = vsel %vm912_vm7, -1e+30, %v1893_v1 }
 0x41c   :  { %v1746_v61 = vpop.eup %1745  ;;  %1751 = vrsqrt.f32 %v712_v59  ;;  %v927_v46 = vsel %vm914_vm8, -1e+30, %v1893_v1 }
 0x41d   :  { %v768_v23 = vsel %vm664_vm3, %v2253_v60, 0  ;;  %v735_v62 = vmul.f32 %v1746_v61, %v2162_v33 }
 0x41e   :  { %v1748_v63 = vpop.eup %1747  ;;  %1674 = vmatpush3.bf16.xpose.msra.mxu0 %v768_v23 }
 0x41f   :  { %v691_v2 = vpop.xlane.xlu0 %690  ;;  %1675 = vmatprep.subr.bf16.mxu0 %v1893_v1  ;;  %v736_v27 = vmul.f32 %v1748_v63, %v2166_v37  ;;  %748 = vst.msk [vmem:[#allocation2 + $0x20] sm:$0xff] %vm664_vm3, %v735_v62 }
 0x420   :  { %v713_v3 = vmax.f32 %v691_v2, 1e-24  ;;  %v917_v2 = vsel %vm904_vm12, -1e+30, %v1893_v1 }
 0x421   :  { %v694_v5 = vpop.xlane.xlu1 %693  ;;  %749 = vst.msk [vmem:[#allocation2 + $0x28] sm:$0xff] %vm664_vm3, %v736_v27  ;;  %v2262_v6 = vpack.c.bf16 %v736_v27, %v735_v62 }
 0x422   :  { %1753 = vrsqrt.f32 %v713_v3  ;;  %v714_v7 = vmax.f32 %v694_v5, 1e-24  ;;  %v891_v5 = vadd.s32 32, %v2316_v42 }
 0x423   :  { %v771_v33 = vsel %vm664_vm3, %v2262_v6, 0 }
 0x424   :  { %v1750_v8 = vpop.eup %1749  ;;  %1755 = vrsqrt.f32 %v714_v7  ;;  %vm906_vm14 = vcmp.eq.s32.totalorder %v891_v5, %v2318_v43 }
 0x425   :  { %v737_v9 = vmul.f32 %v1750_v8, %v2175_v44 }
 0x426   :  { %v1752_v10 = vpop.eup %1751  ;;  %1676 = vmatpush3.bf16.xpose.msra.mxu0 %v771_v33 }
 0x427   :  { %v697_v37 = vpop.xlane.xlu0 %696  ;;  %1677 = vmatprep.subr.bf16.mxu0 %v1893_v1  ;;  %v738_v15 = vmul.f32 %v1752_v10, %v2178_v47  ;;  %750 = vst.msk [vmem:[#allocation2 + $0x30] sm:$0xff] %vm664_vm3, %v737_v9  ;;  %v892_v10 = vadd.s32 40, %v2316_v42 }
 0x428   :  { %v715_v13 = vmax.f32 %v697_v37, 1e-24 }
 0x429   :  { %v700_v16 = vpop.xlane.xlu1 %699  ;;  %751 = vst.msk [vmem:[#allocation2 + $0x38] sm:$0xff] %vm664_vm3, %v738_v15  ;;  %v760_v18 = vpack.c.bf16 %v738_v15, %v737_v9  ;;  %vm907_vm15 = vcmp.eq.s32.totalorder %v892_v10, %v2318_v43  ;;  %v992_v10 = vld [vmem:[%s2583_s6 + $0x48] sm:$0xff] }
 0x42a   :  { %1757 = vrsqrt.f32 %v715_v13  ;;  %v716_v19 = vmax.f32 %v700_v16, 1e-24 }
 0x42b   :  { %v774_v44 = vsel %vm664_vm3, %v760_v18, 0 }
 0x42c   :  { %v1754_v20 = vpop.eup %1753  ;;  %1759 = vrsqrt.f32 %v716_v19 }
 0x42d   :  { %v739_v21 = vmul.f32 %v1754_v20, %v2187_v54 }
 0x42e   :  { %v1756_v12 = vpop.eup %1755  ;;  %1678 = vmatpush3.bf16.xpose.msra.mxu0 %v774_v44 }
 0x42f   :  { %v704_v22 = vpop.xlane.xlu0 %703  ;;  %1679 = vmatprep.subr.bf16.mxu0 %v1893_v1  ;;  %v740_v47 = vmul.f32 %v1756_v12, %v2190_v57  ;;  %752 = vst.msk [vmem:[#allocation2 + $0x40] sm:$0xff] %vm664_vm3, %v739_v21 }
 0x430   :  { %v717_v24 = vmax.f32 %v704_v22, 1e-24 }
 0x431   :  { %753 = vst.msk [vmem:[#allocation2 + $0x48] sm:$0xff] %vm664_vm3, %v740_v47  ;;  %v761_v25 = vpack.c.bf16 %v740_v47, %v739_v21  ;;  %v920_v21 = vsel %vm907_vm15, -1e+30, %v1893_v1 }
 0x432   :  { %1761 = vrsqrt.f32 %v717_v24  ;;  %v894_v24 = vadd.s32 56, %v2316_v42 }
 0x433   :  { %v777_v28 = vsel %vm664_vm3, %v761_v25, 0 }
 0x434   :  { %v1758_v26 = vpop.eup %1757 }
 0x435   :  { %v741_v29 = vmul.f32 %v1758_v26, %v2199_v0 }
 0x436   :  { %v1760_v54 = vpop.eup %1759  ;;  %1680 = vmatpush3.bf16.xpose.msra.mxu0 %v777_v28 }
 0x437   :  { %1681 = vmatprep.subr.bf16.mxu0 %v1893_v1  ;;  %v742_v30 = vmul.f32 %v1760_v54, %v2202_v4  ;;  %754 = vst.msk [vmem:[#allocation2 + $0x50] sm:$0xff] %vm664_vm3, %v741_v29 }
 0x439   :  { %755 = vst.msk [vmem:[#allocation2 + $0x58] sm:$0xff] %vm664_vm3, %v742_v30  ;;  %v762_v57 = vpack.c.bf16 %v742_v30, %v741_v29 }
 0x43b   :  { %v780_v32 = vsel %vm664_vm3, %v762_v57, 0 }
 0x43c   :  { %v1762_v31 = vpop.eup %1761 }
 0x43d   :  { %v743_v34 = vmul.f32 %v1762_v31, %v2211_v11 }
 0x43e   :  { %1682 = vmatpush3.bf16.xpose.msra.mxu0 %v780_v32 }
 0x43f   :  { %1683 = vmatprep.subr.bf16.mxu0 %v1893_v1  ;;  %756 = vst.msk [vmem:[#allocation2 + $0x60] sm:$0xf] %vm701_vm4, %v743_v34  ;;  %v763_v0 = vpack.c.bf16 %v743_v34, %v743_v34  ;;  %v896_v34 = vadd.s32 72, %v2316_v42 }
 0x441   :  { %v783_v35 = vsel %vm664_vm3, %v763_v0, 0  ;;  %vm911_vm1 = vcmp.eq.s32.totalorder %v896_v34, %v2318_v43  ;;  %v1159_v34 = vld [vmem:[#allocation2 + $0x18] sm:$0xff] }
 0x446   :  { %1684 = vmatpush3.bf16.xpose.msra.mxu0 %v783_v35  ;;  %v2288_v4 = vld [vmem:[#allocation2 + $0x63] ss:$0 sm:$0xff] }
 0x447   :  { %v1226_v36 = vld [vmem:[#allocation2 + $0x62] sm:$0x3] }
 0x448   :  { %v1238_v38 = vmul.f32 %v2288_v4, %v1226_v36 }
 0x44a   :  { %v1251_v39 = vmul.f32 1.442695, %v1238_v38 }
 0x44c   :  { %1763 = vpow2.f32 %v1251_v39 }
 0x44d   :  { %1686 = vmatmul.mubr.msk.bf16.vlgmr.msra.gmra.mrb[44].mxu0 %vm664_vm3, %v2244_v50 }
 0x44e   :  { %1689 = vmatprep.mubr.msk.bf16.mxu0 %vm1894_vm0, %v1893_v1 }
 0x455   :  { %1690 = vmatmul.mubr.msk.bf16.gmra.mrb[48].mxu0 %vm664_vm3, %v2253_v60  ;;  %v890_v60 = vadd.s32 24, %v2316_v42 }
 0x456   :  { %1693 = vmatprep.mubr.msk.bf16.mxu0 %vm1894_vm0, %v1893_v1  ;;  %v1764_v11 = vpop.eup %1763 }
 0x457   :  { %v2300_v40 = vsel %vm1207_vm5, %v1764_v11, 0.0  ;;  %vm905_vm13 = vcmp.eq.s32.totalorder %v890_v60, %v2318_v43  ;;  %v924_v11 = vsel %vm911_vm1, -1e+30, %v1893_v1 }
 0x458   :  { %v918_v7 = vsel %vm905_vm13, -1e+30, %v1893_v1 }
 0x45d   :  { %1694 = vmatmul.mubr.msk.bf16.gmra.mrb[52].mxu0 %vm664_vm3, %v2262_v6 }
 0x45e   :  { %1697 = vmatprep.mubr.msk.bf16.mxu0 %vm1894_vm0, %v1893_v1 }
 0x465   :  { %1698 = vmatmul.mubr.msk.bf16.gmra.mrb[56].mxu0 %vm664_vm3, %v760_v18  ;;  %v919_v18 = vsel %vm906_vm14, -1e+30, %v1893_v1 }
 0x466   :  { %1701 = vmatprep.mubr.msk.bf16.mxu0 %vm1894_vm0, %v1893_v1 }
 0x46d   :  { %1702 = vmatmul.mubr.msk.bf16.gmra.mrb[60].mxu0 %vm664_vm3, %v761_v25 }
 0x46e   :  { %1705 = vmatprep.mubr.msk.bf16.mxu0 %vm1894_vm0, %v1893_v1 }
 0x475   :  { %1706 = vmatmul.mubr.msk.bf16.gmra.mrb[64].mxu0 %vm664_vm3, %v762_v57 }
 0x476   :  { %1709 = vmatprep.mubr.msk.bf16.mxu0 %vm1894_vm0, %v1893_v1  ;;  %vm909_vm0 = vcmp.eq.s32.totalorder %v894_v24, %v2318_v43 }
 0x477   :  { %v922_v57 = vsel %vm909_vm0, -1e+30, %v1893_v1 }
 0x47d   :  { %1710 = vmatmul.mubr.msk.bf16.gmra.mrb[68].mxu0 %vm664_vm3, %v763_v0 }
 0x520   :  { %v819_v50 = vpop.f32.mrb[44].mxu0 }
 0x521   :  { %v2340_v14 = vmul.f32 2.0, %v819_v50  ;;  %v1687_v52 = vpop.f32.mrb[45].mxu0  ;;  %v991_v50 = vld [vmem:[%s2583_s6 + $0x40] sm:$0xff] }
 0x522   :  { %v822_v17 = vpop.f32.mrb[46].mxu0 }
 0x523   :  { %v2344_v56 = vmul.f32 2.0, %v822_v17  ;;  %v1688_v58 = vpop.f32.mrb[47].mxu0  ;;  %v928_v59 = vadd.f32 %v915_v51, %v2340_v14  ;;  %v898_v51 = vadd.s32 88, %v2316_v42 }
 0x525   :  { %v942_v61 = vsel %vm941_vm11, %v928_v59, -inf  ;;  %v929_v23 = vadd.f32 %v916_v55, %v2344_v56  ;;  %vm913_vm2 = vcmp.eq.s32.totalorder %v898_v51, %v2318_v43 }
 0x526   :  { %943 = vmax.xlane.f32.xlu1 %v942_v61  ;;  %v926_v59 = vsel %vm913_vm2, -1e+30, %v1893_v1 }
 0x527   :  { %v945_v62 = vsel %vm941_vm11, %v929_v23, -inf }
 0x528   :  { %946 = vmax.xlane.f32.xlu0 %v945_v62  ;;  %v827_v63 = vpop.f32.mrb[48].mxu0 }
 0x529   :  { %v2354_v27 = vmul.f32 2.0, %v827_v63  ;;  %v1691_v3 = vpop.f32.mrb[49].mxu0 }
 0x52a   :  { %v830_v6 = vpop.f32.mrb[50].mxu0 }
 0x52b   :  { %v2358_v8 = vmul.f32 2.0, %v830_v6  ;;  %v1692_v33 = vpop.f32.mrb[51].mxu0  ;;  %v930_v9 = vadd.f32 %v917_v2, %v2354_v27  ;;  %v893_v6 = vadd.s32 48, %v2316_v42  ;;  %v923_v42 = vsel %vm910_vm6, -1e+30, %v1893_v1 }
 0x52c   :  { %v2405_v33 = vld [vmem:[#allocation2 + $0x31] ss:$0 sm:$0xff]  ;;  %vm978_vm6 = vcmask 814080  }
 0x52d   :  { %v948_v37 = vsel %vm941_vm11, %v930_v9, -inf  ;;  %v931_v15 = vadd.f32 %v918_v7, %v2358_v8  ;;  %vm908_vm4 = vcmp.eq.s32.totalorder %v893_v6, %v2318_v43 }
 0x52e   :  { %949 = vmax.xlane.f32.xlu1 %v948_v37  ;;  %v921_v9 = vsel %vm908_vm4, -1e+30, %v1893_v1  ;;  %v1156_v37 = vld [vmem:[#allocation2] sm:$0xff] }
 0x52f   :  { %v951_v13 = vsel %vm941_vm11, %v931_v15, -inf  ;;  %v1168_v15 = vmul.f32 %v2405_v33, %v1156_v37 }
 0x530   :  { %952 = vmax.xlane.f32.xlu0 %v951_v13  ;;  %v835_v16 = vpop.f32.mrb[52].mxu0 }
 0x531   :  { %v2368_v19 = vmul.f32 2.0, %v835_v16  ;;  %v1695_v20 = vpop.f32.mrb[53].mxu0 }
 0x532   :  { %v838_v44 = vpop.f32.mrb[54].mxu0  ;;  %v1157_v20 = vld [vmem:[#allocation2 + $0x8] sm:$0xff] }
 0x533   :  { %v2371_v12 = vmul.f32 2.0, %v838_v44  ;;  %v1696_v22 = vpop.f32.mrb[55].mxu0  ;;  %v932_v47 = vadd.f32 %v919_v18, %v2368_v19  ;;  %v993_v18 = vld [vmem:[%s2583_s6 + $0x50] sm:$0xff]  ;;  %v1175_v44 = vmul.f32 1.442695, %v1168_v15 }
 0x534   :  { %v1220_v15 = vld [vmem:[#allocation2 + $0x32] sm:$0xff] }
 0x535   :  { %v954_v25 = vsel %vm941_vm11, %v932_v47, -inf  ;;  %v933_v26 = vadd.f32 %v920_v21, %v2371_v12  ;;  %v1169_v21 = vmul.f32 %v2405_v33, %v1157_v20  ;;  %1765 = vpow2.f32 %v1175_v44  ;;  %v1161_v20 = vld [vmem:[#allocation2 + $0x28] sm:$0xff] }
 0x536   :  { %955 = vmax.xlane.f32.xlu1 %v954_v25  ;;  %v994_v25 = vld [vmem:[%s2583_s6 + $0x58] sm:$0xff] }
 0x537   :  { %v957_v54 = vsel %vm941_vm11, %v933_v26, -inf  ;;  %v1158_v26 = vld [vmem:[#allocation2 + $0x10] sm:$0xff] }
 0x538   :  { %v843_v28 = vpop.f32.mrb[56].mxu0 }
 0x539   :  { %v1699_v29 = vpop.f32.mrb[57].mxu0  ;;  %v2403_v7 = vmul.f32 2.0, %v843_v28  ;;  %v1177_v28 = vmul.f32 1.442695, %v1169_v21 }
 0x53a   :  { %958 = vmax.xlane.f32.xlu1 %v957_v54  ;;  %v846_v30 = vpop.f32.mrb[58].mxu0  ;;  %v1170_v29 = vmul.f32 %v2405_v33, %v1158_v26 }
 0x53b   :  { %v2380_v31 = vmul.f32 2.0, %v846_v30  ;;  %v1700_v32 = vpop.f32.mrb[59].mxu0  ;;  %v934_v16 = vadd.f32 %v921_v9, %v2403_v7  ;;  %1767 = vpow2.f32 %v1177_v28  ;;  %v2461_v9 = vld [vmem:[%s2584_s7] ss:$0 sm:$0xff]  ;;  %s1896_s7 = smov [#allocation4]  }
 0x53c   :  { %v995_v32 = vld [vmem:[%s2583_s6 + $0x60] sm:$0xf]  ;;  %s1432_s12 = sshll.u32 %s1896_s7, 4  ;;  %s1433_s12 = int_to_ptr.vmem [resolvable:$true] %s1432_s12 }
 0x53d   :  { %v935_v0 = vadd.f32 %v922_v57, %v2380_v31  ;;  %v960_v47 = vsel %vm941_vm11, %v934_v16, -inf  ;;  %s1869_s14 = scalar_lea.vmem %s1433_s12, 16  ;;  %s1873_s15 = scalar_lea.vmem %s1433_s12, 32 }
 0x53e   :  { %p1870_p0 = scmp.ne.s32.totalorder %s1433_s12, %s1869_s14  ;;  %p1874_p1 = scmp.lt.s32.totalorder %s1433_s12, %s1433_s12 }
 0x53f   :  { %v963_v35 = vsel %vm941_vm11, %v935_v0, -inf  ;;  %v1179_v0 = vmul.f32 1.442695, %v1170_v29  ;;  %v1766_v48 = vpop.eup %1765  ;;  %v1221_v29 = vld [vmem:[#allocation2 + $0x3a] sm:$0xff]  ;;  %p1875_p2 = scmp.lt.s32.totalorder %s1873_s15, %s1869_s14 }
 0x540   :  { %964 = vmax.xlane.f32.xlu1 %v963_v35  ;;  %v851_v36 = vpop.f32.mrb[60].mxu0  ;;  %v1171_v35 = vmul.f32 %v2405_v33, %v1159_v34 }
 0x541   :  { %v1703_v38 = vpop.f32.mrb[61].mxu0  ;;  %v2412_v13 = vmul.f32 2.0, %v851_v36  ;;  %1769 = vpow2.f32 %v1179_v0  ;;  %p1876_p3 = por %p1875_p2, %p1874_p1 }
 0x542   :  { %v854_v39 = vpop.f32.mrb[62].mxu0 }
 0x543   :  { %v2387_v41 = vmul.f32 2.0, %v854_v39  ;;  %v1704_v49 = vpop.f32.mrb[63].mxu0  ;;  %v936_v24 = vadd.f32 %v923_v42, %v2412_v13  ;;  %v1181_v39 = vmul.f32 1.442695, %v1171_v35  ;;  %v1232_v42 = vmul.f32 %v2288_v4, %v1220_v15  ;;  %p1877_p4 = pnand %p1876_p3, %p1870_p0 }
 0x545   :  { %v937_v52 = vadd.f32 %v924_v11, %v2387_v41  ;;  %v966_v30 = vsel %vm941_vm11, %v936_v24, -inf  ;;  %1771 = vpow2.f32 %v1181_v39  ;;  %v1189_v11 = vsel %vm664_vm3, %v1766_v48, 0.0  ;;  %v1768_v49 = vpop.eup %1767 }
 0x546   :  { %1025 = vperm.xlu0 %1721, %v991_v50   ;;  %v1192_v50 = vsel %vm664_vm3, %v1768_v49, 0.0  ;;  %v1239_v28 = vmul.f32 1.442695, %v1232_v42 }
 0x547   :  { %v969_v53 = vsel %vm941_vm11, %v937_v52, -inf  ;;  %v1160_v52 = vld [vmem:[#allocation2 + $0x20] sm:$0xff] }
 0x548   :  { %970 = vmax.xlane.f32.xlu1 %v969_v53  ;;  %v859_v17 = vpop.f32.mrb[64].mxu0  ;;  %v1172_v53 = vmul.f32 %v2405_v33, %v1160_v52 }
 0x549   :  { %v1707_v55 = vpop.f32.mrb[65].mxu0  ;;  %v2423_v22 = vmul.f32 2.0, %v859_v17 }
 0x54a   :  { %v862_v58 = vpop.f32.mrb[66].mxu0 }
 0x54b   :  { %v2397_v60 = vmul.f32 2.0, %v862_v58  ;;  %v1708_v61 = vpop.f32.mrb[67].mxu0  ;;  %v938_v57 = vadd.f32 %v925_v45, %v2423_v22  ;;  %v1770_v51 = vpop.eup %1769  ;;  %v1183_v58 = vmul.f32 1.442695, %v1172_v53 }
 0x54c   :  { %v1195_v17 = vsel %vm664_vm3, %v1770_v51, 0.0 }
 0x54d   :  { %v939_v23 = vadd.f32 %v926_v59, %v2397_v60  ;;  %v972_v36 = vsel %vm941_vm11, %v938_v57, -inf  ;;  %1773 = vpow2.f32 %v1183_v58 }
 0x54f   :  { %v975_v62 = vsel %vm941_vm11, %v939_v23, -inf  ;;  %v1772_v55 = vpop.eup %1771 }
 0x550   :  { %976 = vmax.xlane.f32.xlu1 %v975_v62  ;;  %v867_v63 = vpop.f32.mrb[68].mxu0  ;;  %v1198_v59 = vsel %vm664_vm3, %v1772_v55, 0.0  ;;  %v1005_v62 = vpop.permute.xlu1 %1004 }
 0x551   :  { %v1711_v2 = vpop.f32.mrb[69].mxu0  ;;  %v2435_v54 = vmul.f32 2.0, %v867_v63  ;;  %v1002_v63 = vpop.permute.xlu0 %1001  ;;  %vm1040_vm8 = vcmp.eq.s32.totalorder %v2461_v9, %v1005_v62 }
 0x552   :  { %v870_v3 = vpop.f32.mrb[70].mxu0  ;;  %vm1039_vm7 = vcmp.eq.s32.totalorder %v2461_v9, %v1002_v63  ;;  %v1053_v26 = vsel %vm1040_vm8, -1e+30, %v1893_v1 }
 0x553   :  { %v1712_v5 = vpop.f32.mrb[71].mxu0  ;;  %v940_v38 = vadd.f32 %v927_v46, %v2435_v54  ;;  %v1052_v44 = vsel %vm1039_vm7, -1e+30, %v1893_v1  ;;  %v1233_v46 = vmul.f32 %v2288_v4, %v1221_v29  ;;  %vm1211_vm7 = vcmask 7168  }
 0x554   :  { %v1011_v2 = vpop.permute.xlu1 %1010 }
 0x555   :  { %v979_v43 = vsel %vm978_vm6, %v940_v38, -inf  ;;  %v1008_v3 = vpop.permute.xlu0 %1007  ;;  %vm1042_vm10 = vcmp.eq.s32.totalorder %v2461_v9, %v1011_v2  ;;  %v1241_v35 = vmul.f32 1.442695, %v1233_v46 }
 0x556   :  { %vm1041_vm9 = vcmp.eq.s32.totalorder %v2461_v9, %v1008_v3 }
 0x557   :  { %v1774_v61 = vpop.eup %1773 }
 0x558   :  { %v1201_v23 = vsel %vm664_vm3, %v1774_v61, 0.0  ;;  %v2456_v5 = vpop.permute.xlu1 %1016 }
 0x559   :  { %v1014_v6 = vpop.permute.xlu0 %1013  ;;  %vm1044_vm13 = vcmp.eq.s32.totalorder %v2461_v9, %v2456_v5 }
 0x55a   :  { %vm1043_vm12 = vcmp.eq.s32.totalorder %v2461_v9, %v1014_v6 }
 0x55d   :  { %v2465_v37 = vpop.permute.xlu0 %1019 }
 0x55e   :  { %vm1045_vm15 = vcmp.eq.s32.totalorder %v2461_v9, %v2465_v37 }
 0x561   :  { %1028 = vperm.xlu1 %1722, %v992_v10   ;;  %v2463_v10 = vpop.permute.xlu1 %1022 }
 0x562   :  { %vm1046_vm14 = vcmp.eq.s32.totalorder %v2461_v9, %v2463_v10 }
 0x565   :  { %961 = vmax.xlane.f32.xlu0 %v960_v47  ;;  %1031 = vperm.xlu1 %1722, %v993_v18   ;;  %v1173_v47 = vmul.f32 %v2405_v33, %v1161_v20 }
 0x569   :  { %967 = vmax.xlane.f32.xlu0 %v966_v30  ;;  %1034 = vperm.xlu1 %1722, %v994_v25   ;;  %v1162_v25 = vld [vmem:[#allocation2 + $0x30] sm:$0x3] }
 0x56a   :  { %v1174_v34 = vmul.f32 %v2405_v33, %v1162_v25 }
 0x56c   :  { %v1187_v48 = vmul.f32 1.442695, %v1174_v34 }
 0x56d   :  { %973 = vmax.xlane.f32.xlu0 %v972_v36  ;;  %1037 = vperm.xlu1 %1722, %v995_v32   ;;  %v1185_v32 = vmul.f32 1.442695, %v1173_v47  ;;  %v1054_v36 = vsel %vm1041_vm9, -1e+30, %v1893_v1 }
 0x571   :  { %980 = vmax.xlane.f32.xlu0 %v979_v43 }
 0x575   :  { %1190 = vadd.xlane.f32.xlu0 %v1189_v11  ;;  %v1055_v11 = vsel %vm1042_vm10, -1e+30, %v1893_v1 }
 0x579   :  { %1193 = vadd.xlane.f32.xlu0 %v1192_v50 }
 0x57d   :  { %1196 = vadd.xlane.f32.xlu0 %v1195_v17  ;;  %v1056_v17 = vsel %vm1043_vm12, -1e+30, %v1893_v1 }
 0x581   :  { %1199 = vadd.xlane.f32.xlu0 %v1198_v59 }
 0x591   :  { %1202 = vadd.xlane.f32.xlu1 %v1201_v23 }
 0x5b3   :  { %v944_v16 = vpop.xlane.xlu1 %943 }
 0x5b4   :  { %v1065_v18 = vsub.f32 %v2340_v14, %v944_v16 }
 0x5b5   :  { %v947_v21 = vpop.xlane.xlu0 %946 }
 0x5b6   :  { %v1078_v24 = vadd.f32 %v1065_v18, %v1052_v44  ;;  %v1066_v45 = vsub.f32 %v2344_v56, %v947_v21 }
 0x5b8   :  { %v1091_v30 = vmul.f32 1.442695, %v1078_v24  ;;  %v1079_v57 = vadd.f32 %v1066_v45, %v1053_v26 }
 0x5ba   :  { %1775 = vpow2.f32 %v1091_v30  ;;  %v1093_v14 = vmul.f32 1.442695, %v1079_v57 }
 0x5bb   :  { %v950_v0 = vpop.xlane.xlu1 %949  ;;  %1777 = vpow2.f32 %v1239_v28 }
 0x5bc   :  { %1779 = vpow2.f32 %v1093_v14  ;;  %v1067_v56 = vsub.f32 %v2354_v27, %v950_v0 }
 0x5bd   :  { %v953_v38 = vpop.xlane.xlu0 %952  ;;  %1781 = vpow2.f32 %v1185_v32 }
 0x5be   :  { %v1080_v39 = vadd.f32 %v1067_v56, %v1054_v36  ;;  %v1068_v43 = vsub.f32 %v2358_v8, %v953_v38  ;;  %1783 = vpow2.f32 %v1241_v35 }
 0x5bf   :  { %1785 = vpow2.f32 %v1187_v48 }
 0x5c0   :  { %v1095_v49 = vmul.f32 1.442695, %v1080_v39  ;;  %v1081_v33 = vadd.f32 %v1068_v43, %v1055_v11  ;;  %v1058_v11 = vsel %vm1045_vm15, -1e+30, %v1893_v1 }
 0x5c2   :  { %1787 = vpow2.f32 %v1095_v49  ;;  %v1097_v27 = vmul.f32 1.442695, %v1081_v33 }
 0x5c3   :  { %v956_v50 = vpop.xlane.xlu1 %955 }
 0x5c4   :  { %v1776_v51 = vpop.eup %1775  ;;  %v1069_v52 = vsub.f32 %v2368_v19, %v956_v50  ;;  %1789 = vpow2.f32 %v1097_v27  ;;  %v1057_v19 = vsel %vm1044_vm13, -1e+30, %v1893_v1 }
 0x5c5   :  { %v1778_v53 = vpop.eup %1777  ;;  %v1117_v8 = vsel %vm941_vm11, %v1776_v51, 0.0  ;;  %v1026_v0 = vpop.permute.xlu0 %1025 }
 0x5c6   :  { %v1780_v55 = vpop.eup %1779  ;;  %v1082_v58 = vadd.f32 %v1069_v52, %v1056_v17  ;;  %1118 = vadd.xlane.f32.xlu0 %v1117_v8  ;;  %v1253_v2 = vsel %vm664_vm3, %v1778_v53, 0.0  ;;  %vm1047_vm0 = vcmp.eq.s32.totalorder %v2461_v9, %v1026_v0  ;;  %v1222_v52 = vld [vmem:[#allocation2 + $0x42] sm:$0xff] }
 0x5c7   :  { %v959_v59 = vpop.xlane.xlu1 %958  ;;  %v1120_v61 = vsel %vm941_vm11, %v1780_v55, 0.0  ;;  %v1782_v23 = vpop.eup %1781  ;;  %v1060_v50 = vsel %vm1047_vm0, -1e+30, %v1893_v1  ;;  %v1234_v8 = vmul.f32 %v2288_v4, %v1222_v52 }
 0x5c8   :  { %v1099_v62 = vmul.f32 1.442695, %v1082_v58  ;;  %v1070_v63 = vsub.f32 %v2371_v12, %v959_v59  ;;  %1121 = vadd.xlane.f32.xlu1 %v1120_v61  ;;  %v1784_v3 = vpop.eup %1783  ;;  %v1204_v5 = vsel %vm664_vm3, %v1782_v23, 0.0 }
 0x5c9   :  { %v1786_v15 = vpop.eup %1785  ;;  %v1256_v42 = vsel %vm664_vm3, %v1784_v3, 0.0 }
 0x5ca   :  { %v1083_v6 = vadd.f32 %v1070_v63, %v1057_v19  ;;  %1254 = vadd.xlane.f32.xlu0 %v1253_v2  ;;  %1791 = vpow2.f32 %v1099_v62  ;;  %v1208_v12 = vsel %vm1207_vm5, %v1786_v15, 0.0  ;;  %v1243_v62 = vmul.f32 1.442695, %v1234_v8  ;;  %v1224_v15 = vld [vmem:[#allocation2 + $0x52] sm:$0xff] }
 0x5cc   :  { %v1101_v16 = vmul.f32 1.442695, %v1083_v6  ;;  %1205 = vadd.xlane.f32.xlu1 %v1204_v5  ;;  %v1788_v18 = vpop.eup %1787  ;;  %v1225_v5 = vld [vmem:[#allocation2 + $0x5a] sm:$0xff] }
 0x5cd   :  { %v1123_v20 = vsel %vm941_vm11, %v1788_v18, 0.0  ;;  %v965_v21 = vpop.xlane.xlu1 %964 }
 0x5ce   :  { %1257 = vadd.xlane.f32.xlu0 %v1256_v42  ;;  %1793 = vpow2.f32 %v1101_v16  ;;  %v1790_v44 = vpop.eup %1789  ;;  %v1072_v56 = vsub.f32 %v2380_v31, %v965_v21  ;;  %v1236_v42 = vmul.f32 %v2288_v4, %v1224_v15 }
 0x5cf   :  { %v1126_v47 = vsel %vm941_vm11, %v1790_v44, 0.0 }
 0x5d0   :  { %1209 = vadd.xlane.f32.xlu1 %v1208_v12  ;;  %v1247_v21 = vmul.f32 1.442695, %v1236_v42 }
 0x5d2   :  { %1124 = vadd.xlane.f32.xlu0 %v1123_v20  ;;  %v1237_v20 = vmul.f32 %v2288_v4, %v1225_v5 }
 0x5d4   :  { %v1792_v24 = vpop.eup %1791 }
 0x5d5   :  { %v971_v45 = vpop.xlane.xlu1 %970  ;;  %v1129_v25 = vsel %vm941_vm11, %v1792_v24, 0.0 }
 0x5d6   :  { %1127 = vadd.xlane.f32.xlu0 %v1126_v47  ;;  %v1074_v57 = vsub.f32 %v2387_v41, %v971_v45  ;;  %v1059_v41 = vsel %vm1046_vm14, -1e+30, %v1893_v1  ;;  %v1249_v47 = vmul.f32 1.442695, %v1237_v20 }
 0x5d7   :  { %v1085_v39 = vadd.f32 %v1072_v56, %v1059_v41 }
 0x5d8   :  { %v1794_v26 = vpop.eup %1793 }
 0x5d9   :  { %v1132_v29 = vsel %vm941_vm11, %v1794_v26, 0.0  ;;  %v1105_v37 = vmul.f32 1.442695, %v1085_v39 }
 0x5da   :  { %1130 = vadd.xlane.f32.xlu0 %v1129_v25 }
 0x5dd   :  { %v977_v28 = vpop.xlane.xlu1 %976 }
 0x5de   :  { %1133 = vadd.xlane.f32.xlu0 %v1132_v29 }
 0x5e1   :  { %v1029_v30 = vpop.permute.xlu1 %1028 }
 0x5e2   :  { %vm1048_vm5 = vcmp.eq.s32.totalorder %v2461_v9, %v1029_v30 }
 0x5e3   :  { %v1061_v46 = vsel %vm1048_vm5, -1e+30, %v1893_v1 }
 0x5e4   :  { %v1087_v32 = vadd.f32 %v1074_v57, %v1061_v46 }
 0x5e5   :  { %v1032_v34 = vpop.permute.xlu1 %1031 }
 0x5e6   :  { %v1109_v14 = vmul.f32 1.442695, %v1087_v32  ;;  %vm1049_vm2 = vcmp.eq.s32.totalorder %v2461_v9, %v1032_v34 }
 0x5e7   :  { %v1062_v59 = vsel %vm1049_vm2, -1e+30, %v1893_v1 }
 0x5e8   :  { %1795 = vpow2.f32 %v1109_v14 }
 0x5e9   :  { %v1035_v36 = vpop.permute.xlu1 %1034 }
 0x5ea   :  { %vm1050_vm1 = vcmp.eq.s32.totalorder %v2461_v9, %v1035_v36 }
 0x5eb   :  { %v1063_v51 = vsel %vm1050_vm1, -1e+30, %v1893_v1 }
 0x5ed   :  { %v1038_v53 = vpop.permute.xlu1 %1037 }
 0x5ee   :  { %vm1051_vm4 = vcmp.eq.s32.totalorder %v2461_v9, %v1038_v53 }
 0x5ef   :  { %v1064_v6 = vsel %vm1051_vm4, -1e+30, %v1893_v1 }
 0x5f2   :  { %v1796_v35 = vpop.eup %1795  ;;  %v962_v38 = vpop.xlane.xlu0 %961 }
 0x5f3   :  { %v1071_v43 = vsub.f32 %v2403_v7, %v962_v38  ;;  %v1144_v48 = vsel %vm941_vm11, %v1796_v35, 0.0  ;;  %v1076_v7 = vsub.f32 %v2397_v60, %v977_v28  ;;  %v1223_v60 = vld [vmem:[#allocation2 + $0x4a] sm:$0xff] }
 0x5f4   :  { %1145 = vadd.xlane.f32.xlu1 %v1144_v48  ;;  %v1235_v63 = vmul.f32 %v2288_v4, %v1223_v60 }
 0x5f5   :  { %v1084_v31 = vadd.f32 %v1071_v43, %v1058_v11  ;;  %v1089_v55 = vadd.f32 %v1076_v7, %v1063_v51 }
 0x5f6   :  { %v968_v10 = vpop.xlane.xlu0 %967  ;;  %v1245_v9 = vmul.f32 1.442695, %v1235_v63 }
 0x5f7   :  { %v1103_v49 = vmul.f32 1.442695, %v1084_v31  ;;  %v1073_v33 = vsub.f32 %v2412_v13, %v968_v10  ;;  %v1113_v19 = vmul.f32 1.442695, %v1089_v55 }
 0x5f9   :  { %1797 = vpow2.f32 %v1103_v49  ;;  %v1086_v27 = vadd.f32 %v1073_v33, %v1060_v50 }
 0x5fa   :  { %v974_v17 = vpop.xlane.xlu0 %973  ;;  %1799 = vpow2.f32 %v1105_v37 }
 0x5fb   :  { %v1107_v58 = vmul.f32 1.442695, %v1086_v27  ;;  %v1075_v13 = vsub.f32 %v2423_v22, %v974_v17 }
 0x5fd   :  { %v1088_v61 = vadd.f32 %v1075_v13, %v1062_v59  ;;  %1801 = vpow2.f32 %v1107_v58 }
 0x5fe   :  { %v981_v23 = vpop.xlane.xlu0 %980 }
 0x5ff   :  { %v1111_v2 = vmul.f32 1.442695, %v1088_v61  ;;  %v1077_v3 = vsub.f32 %v2435_v54, %v981_v23 }
 0x601   :  { %1803 = vpow2.f32 %v1111_v2  ;;  %v1090_v22 = vadd.f32 %v1077_v3, %v1064_v6 }
 0x602   :  { %v1191_v16 = vpop.xlane.xlu0 %1190  ;;  %1805 = vpow2.f32 %v1243_v62 }
 0x603   :  { %v1798_v18 = vpop.eup %1797  ;;  %1807 = vpow2.f32 %v1113_v19  ;;  %v1115_v12 = vmul.f32 1.442695, %v1090_v22  ;;  %1212 = vst.msk [vmem:[#allocation3] sm:$0xff] %vm1211_vm7, %v1191_v16 }
 0x604   :  { %v1135_v54 = vsel %vm941_vm11, %v1798_v18, 0.0  ;;  %v1800_v1 = vpop.eup %1799  ;;  %1809 = vpow2.f32 %v1245_v9 }
 0x605   :  { %1136 = vadd.xlane.f32.xlu0 %v1135_v54  ;;  %1811 = vpow2.f32 %v1115_v12  ;;  %v1138_v24 = vsel %vm941_vm11, %v1800_v1, 0.0 }
 0x606   :  { %v1194_v44 = vpop.xlane.xlu0 %1193  ;;  %1813 = vpow2.f32 %v1247_v21 }
 0x607   :  { %1213 = vst.msk [vmem:[#allocation3 + $0x8] sm:$0xff] %vm1211_vm7, %v1194_v44  ;;  %v1802_v45 = vpop.eup %1801  ;;  %1815 = vpow2.f32 %v1249_v47 }
 0x608   :  { %v1141_v28 = vsel %vm941_vm11, %v1802_v45, 0.0 }
 0x609   :  { %1139 = vadd.xlane.f32.xlu0 %v1138_v24 }
 0x60a   :  { %v1197_v25 = vpop.xlane.xlu0 %1196  ;;  %v1281_v59 = vld [vmem:[#allocation3] sm:$0xff] }
 0x60b   :  { %v1804_v26 = vpop.eup %1803  ;;  %1214 = vst.msk [vmem:[#allocation3 + $0x10] sm:$0xff] %vm1211_vm7, %v1197_v25 }
 0x60c   :  { %v1806_v4 = vpop.eup %1805  ;;  %v1147_v29 = vsel %vm941_vm11, %v1804_v26, 0.0 }
 0x60d   :  { %v1808_v30 = vpop.eup %1807  ;;  %1142 = vadd.xlane.f32.xlu0 %v1141_v28  ;;  %1148 = vadd.xlane.f32.xlu1 %v1147_v29  ;;  %v1259_v32 = vsel %vm664_vm3, %v1806_v4, 0.0 }
 0x60e   :  { %v1200_v57 = vpop.xlane.xlu0 %1199  ;;  %v1810_v46 = vpop.eup %1809  ;;  %v1150_v14 = vsel %vm941_vm11, %v1808_v30, 0.0  ;;  %vm1218_vm11 = vcmask 1024   ;;  %v1282_v13 = vld [vmem:[#allocation3 + $0x8] sm:$0xff] }
 0x60f   :  { %1215 = vst.msk [vmem:[#allocation3 + $0x18] sm:$0xff] %vm1211_vm7, %v1200_v57  ;;  %v1812_v34 = vpop.eup %1811  ;;  %v1262_v56 = vsel %vm664_vm3, %v1810_v46, 0.0 }
 0x610   :  { %v1814_v0 = vpop.eup %1813  ;;  %v1153_v35 = vsel %vm978_vm6, %v1812_v34, 0.0  ;;  %vm1424_vm6 = vcmask 0  }
 0x611   :  { %1260 = vadd.xlane.f32.xlu0 %v1259_v32  ;;  %1151 = vadd.xlane.f32.xlu1 %v1150_v14  ;;  %v1816_v41 = vpop.eup %1815  ;;  %v1265_v36 = vsel %vm664_vm3, %v1814_v0, 0.0 }
 0x612   :  { %v1268_v38 = vsel %vm664_vm3, %v1816_v41, 0.0  ;;  %v1283_v23 = vld [vmem:[#allocation3 + $0x10] sm:$0xff]  ;;  %vm1408_vm3 = vcmask 3072  }
 0x615   :  { %1263 = vadd.xlane.f32.xlu0 %v1262_v56  ;;  %1154 = vadd.xlane.f32.xlu1 %v1153_v35 }
 0x616   :  { %v1284_v3 = vld [vmem:[#allocation3 + $0x18] sm:$0xff] }
 0x619   :  { %1266 = vadd.xlane.f32.xlu0 %v1265_v36  ;;  %1269 = vadd.xlane.f32.xlu1 %v1268_v38 }
 0x61d   :  { %1272 = vadd.xlane.f32.xlu0 %v2300_v40 }
 0x61e   :  { %v1203_v39 = vpop.xlane.xlu1 %1202 }
 0x61f   :  { %1216 = vst.msk [vmem:[#allocation3 + $0x20] sm:$0xff] %vm1211_vm7, %v1203_v39 }
 0x626   :  { %v1285_v42 = vld [vmem:[#allocation3 + $0x20] sm:$0xff] }
 0x653   :  { %v1119_v43 = vpop.xlane.xlu0 %1118 }
 0x654   :  { %v1294_v51 = vadd.f32 1e-06, %v1119_v43 }
 0x655   :  { %v1122_v48 = vpop.xlane.xlu1 %1121 }
 0x656   :  { %v1295_v33 = vadd.f32 1e-06, %v1122_v48 }
 0x657   :  { %v1255_v11 = vpop.xlane.xlu0 %1254 }
 0x658   :  { %1274 = vst.msk [vmem:[#allocation3 + $0x32] sm:$0xff] %vm1211_vm7, %v1255_v11  ;;  %1817 = vrcp.f32 %v1295_v33 }
 0x659   :  { %v1206_v31 = vpop.xlane.xlu1 %1205  ;;  %1819 = vrcp.f32 %v1294_v51 }
 0x65a   :  { %1217 = vst.msk [vmem:[#allocation3 + $0x28] sm:$0xff] %vm1211_vm7, %v1206_v31 }
 0x65b   :  { %v1258_v10 = vpop.xlane.xlu0 %1257 }
 0x65c   :  { %1275 = vst.msk [vmem:[#allocation3 + $0x3a] sm:$0xff] %vm1211_vm7, %v1258_v10 }
 0x65d   :  { %v1210_v37 = vpop.xlane.xlu1 %1209 }
 0x65e   :  { %1219 = vst.msk [vmem:[#allocation3 + $0x30] sm:$0x3] %vm1218_vm11, %v1210_v37 }
 0x65f   :  { %v1125_v49 = vpop.xlane.xlu0 %1124 }
 0x660   :  { %v1296_v7 = vadd.f32 1e-06, %v1125_v49 }
 0x661   :  { %v1286_v12 = vld [vmem:[#allocation3 + $0x28] sm:$0xff] }
 0x662   :  { %1821 = vrcp.f32 %v1296_v7  ;;  %v1818_v8 = vpop.eup %1817 }
 0x663   :  { %v1128_v40 = vpop.xlane.xlu0 %1127  ;;  %v1820_v55 = vpop.eup %1819  ;;  %v1321_v61 = vmul.f32 %v1818_v8, %v1282_v13  ;;  %v1288_v43 = vld [vmem:[#allocation3 + $0x38] sm:$0xff] }
 0x664   :  { %v1297_v27 = vadd.f32 1e-06, %v1128_v40  ;;  %v1320_v60 = vmul.f32 %v1820_v55, %v1281_v59 }
 0x665   :  { %v1334_v2 = vadd.f32 1e-06, %v1321_v61  ;;  %v1287_v46 = vld [vmem:[#allocation3 + $0x30] sm:$0xff] }
 0x666   :  { %1823 = vrcp.f32 %v1297_v27  ;;  %v1333_v5 = vadd.f32 1e-06, %v1320_v60 }
 0x667   :  { %v1131_v50 = vpop.xlane.xlu0 %1130 }
 0x668   :  { %v1298_v53 = vadd.f32 1e-06, %v1131_v50 }
 0x66a   :  { %1825 = vrcp.f32 %v1298_v53 }
 0x66b   :  { %v1134_v52 = vpop.xlane.xlu0 %1133 }
 0x66c   :  { %v1299_v17 = vadd.f32 1e-06, %v1134_v52  ;;  %v1822_v58 = vpop.eup %1821 }
 0x66d   :  { %v1322_v63 = vmul.f32 %v1822_v58, %v1283_v23 }
 0x66e   :  { %1827 = vrcp.f32 %v1299_v17 }
 0x66f   :  { %v1335_v9 = vadd.f32 1e-06, %v1322_v63 }
 0x670   :  { %v1824_v62 = vpop.eup %1823 }
 0x671   :  { %v1323_v22 = vmul.f32 %v1824_v62, %v1284_v3 }
 0x673   :  { %v1336_v1 = vadd.f32 1e-06, %v1323_v22 }
 0x674   :  { %v1826_v19 = vpop.eup %1825 }
 0x675   :  { %v1324_v18 = vmul.f32 %v1826_v19, %v1285_v42 }
 0x677   :  { %v1337_v47 = vadd.f32 1e-06, %v1324_v18 }
 0x678   :  { %v1828_v16 = vpop.eup %1827 }
 0x679   :  { %v1325_v44 = vmul.f32 %v1828_v16, %v1286_v12 }
 0x67b   :  { %v1338_v25 = vadd.f32 1e-06, %v1325_v44 }
 0x681   :  { %v1146_v20 = vpop.xlane.xlu1 %1145 }
 0x682   :  { %v1303_v4 = vadd.f32 1e-06, %v1146_v20 }
 0x692   :  { %v1137_v6 = vpop.xlane.xlu0 %1136 }
 0x693   :  { %v1300_v15 = vadd.f32 1e-06, %v1137_v6 }
 0x695   :  { %1829 = vrcp.f32 %v1300_v15 }
 0x696   :  { %1831 = vlog2.f32 %v1334_v2  ;;  %v1140_v54 = vpop.xlane.xlu0 %1139 }
 0x697   :  { %1833 = vlog2.f32 %v1333_v5  ;;  %v1301_v21 = vadd.f32 1e-06, %v1140_v54 }
 0x698   :  { %1835 = vlog2.f32 %v1335_v9 }
 0x699   :  { %1837 = vrcp.f32 %v1301_v21 }
 0x69a   :  { %v1149_v24 = vpop.xlane.xlu1 %1148  ;;  %v1143_v45 = vpop.xlane.xlu0 %1142  ;;  %1839 = vlog2.f32 %v1336_v1 }
 0x69b   :  { %v1302_v26 = vadd.f32 1e-06, %v1143_v45  ;;  %1841 = vlog2.f32 %v1337_v47  ;;  %v1304_v28 = vadd.f32 1e-06, %v1149_v24 }
 0x69d   :  { %1843 = vrcp.f32 %v1302_v26 }
 0x69e   :  { %v1152_v29 = vpop.xlane.xlu1 %1151  ;;  %v1261_v30 = vpop.xlane.xlu0 %1260  ;;  %1845 = vlog2.f32 %v1338_v25 }
 0x69f   :  { %v1830_v57 = vpop.eup %1829  ;;  %v1305_v32 = vadd.f32 1e-06, %v1152_v29  ;;  %1276 = vst.msk [vmem:[#allocation3 + $0x42] sm:$0xff] %vm1211_vm7, %v1261_v30  ;;  %1847 = vrcp.f32 %v1303_v4 }
 0x6a0   :  { %v1832_v14 = vpop.eup %1831  ;;  %v1326_v34 = vmul.f32 %v1830_v57, %v1287_v46  ;;  %1849 = vrcp.f32 %v1304_v28 }
 0x6a1   :  { %v1834_v0 = vpop.eup %1833  ;;  %v1349_v39 = vmul.f32 0.6931472, %v1832_v14  ;;  %1851 = vrcp.f32 %v1305_v32 }
 0x6a2   :  { %v1836_v56 = vpop.eup %1835  ;;  %v1339_v35 = vadd.f32 1e-06, %v1326_v34  ;;  %v1155_v41 = vpop.xlane.xlu1 %1154  ;;  %v1347_v10 = vmul.f32 0.6931472, %v1834_v0 }
 0x6a3   :  { %v1264_v36 = vpop.xlane.xlu0 %1263  ;;  %v1838_v38 = vpop.eup %1837  ;;  %v1306_v48 = vadd.f32 1e-06, %v1155_v41  ;;  %v1351_v37 = vmul.f32 0.6931472, %v1836_v56  ;;  %v1373_v7 = vsub.f32 0.0, %v1349_v39 }
 0x6a4   :  { %1277 = vst.msk [vmem:[#allocation3 + $0x4a] sm:$0xff] %vm1211_vm7, %v1264_v36  ;;  %1853 = vlog2.f32 %v1339_v35  ;;  %v1327_v11 = vmul.f32 %v1838_v38, %v1288_v43  ;;  %v1840_v31 = vpop.eup %1839  ;;  %v1372_v17 = vsub.f32 0.0, %v1347_v10 }
 0x6a5   :  { %v1842_v51 = vpop.eup %1841  ;;  %1855 = vrcp.f32 %v1306_v48  ;;  %v1353_v52 = vmul.f32 0.6931472, %v1840_v31  ;;  %v1374_v58 = vsub.f32 0.0, %v1351_v37  ;;  %v1386_v60 = vsel %vm1211_vm7, %v1373_v7, 0.0 }
 0x6a6   :  { %v1340_v49 = vadd.f32 1e-06, %v1327_v11  ;;  %v1270_v40 = vpop.xlane.xlu1 %1269  ;;  %v1289_v50 = vld [vmem:[#allocation3 + $0x40] sm:$0xff]  ;;  %v1355_v13 = vmul.f32 0.6931472, %v1842_v51  ;;  %v1385_v6 = vsel %vm1211_vm7, %v1372_v17, 0.0 }
 0x6a7   :  { %v1267_v33 = vpop.xlane.xlu0 %1266  ;;  %1279 = vst.msk [vmem:[#allocation3 + $0x5a] sm:$0xff] %vm1211_vm7, %v1270_v40  ;;  %v1844_v27 = vpop.eup %1843  ;;  %v1375_v19 = vsub.f32 0.0, %v1353_v52  ;;  %v1387_v15 = vadd.f32 %v1386_v60, %v1385_v6  ;;  %v1388_v16 = vsel %vm1211_vm7, %v1374_v58, 0.0 }
 0x6a8   :  { %1278 = vst.msk [vmem:[#allocation3 + $0x52] sm:$0xff] %vm1211_vm7, %v1267_v33  ;;  %1857 = vlog2.f32 %v1340_v49  ;;  %v1846_v53 = vpop.eup %1845  ;;  %v1328_v8 = vmul.f32 %v1844_v27, %v1289_v50  ;;  %v1376_v9 = vsub.f32 0.0, %v1355_v13 }
 0x6a9   :  { %v1848_v55 = vpop.eup %1847  ;;  %v1357_v2 = vmul.f32 0.6931472, %v1846_v53  ;;  %v1390_v1 = vsel %vm1211_vm7, %v1375_v19, 0.0  ;;  %v1389_v47 = vadd.f32 %v1388_v16, %v1387_v15 }
 0x6aa   :  { %v1341_v62 = vadd.f32 1e-06, %v1328_v8  ;;  %v1850_v63 = vpop.eup %1849  ;;  %v1392_v26 = vsel %vm1211_vm7, %v1376_v9, 0.0 }
 0x6ab   :  { %v1273_v59 = vpop.xlane.xlu0 %1272  ;;  %v1290_v61 = vld [vmem:[#allocation3 + $0x48] sm:$0xff]  ;;  %v1852_v3 = vpop.eup %1851  ;;  %v1377_v44 = vsub.f32 0.0, %v1357_v2  ;;  %v1391_v29 = vadd.f32 %v1390_v1, %v1389_v47 }
 0x6ac   :  { %1280 = vst.msk [vmem:[#allocation3 + $0x62] sm:$0x3] %vm1218_vm11, %v1273_v59  ;;  %v1329_v23 = vmul.f32 %v1848_v55, %v1290_v61  ;;  %1859 = vlog2.f32 %v1341_v62 }
 0x6ad   :  { %v1394_v46 = vsel %vm1211_vm7, %v1377_v44, 0.0  ;;  %v1393_v34 = vadd.f32 %v1392_v26, %v1391_v29 }
 0x6ae   :  { %v1342_v5 = vadd.f32 1e-06, %v1329_v23  ;;  %v1854_v22 = vpop.eup %1853 }
 0x6af   :  { %v1291_v42 = vld [vmem:[#allocation3 + $0x50] sm:$0xff]  ;;  %v1292_v18 = vld [vmem:[#allocation3 + $0x58] sm:$0xff]  ;;  %v1359_v12 = vmul.f32 0.6931472, %v1854_v22  ;;  %v1856_v21 = vpop.eup %1855  ;;  %v1395_v35 = vadd.f32 %v1394_v46, %v1393_v34 }
 0x6b0   :  { %v1330_v20 = vmul.f32 %v1850_v63, %v1291_v42  ;;  %v1331_v54 = vmul.f32 %v1852_v3, %v1292_v18  ;;  %1861 = vlog2.f32 %v1342_v5 }
 0x6b1   :  { %v1378_v4 = vsub.f32 0.0, %v1359_v12 }
 0x6b2   :  { %v1343_v24 = vadd.f32 1e-06, %v1330_v20  ;;  %v1344_v45 = vadd.f32 1e-06, %v1331_v54  ;;  %v1858_v25 = vpop.eup %1857 }
 0x6b3   :  { %v1293_v28 = vld [vmem:[#allocation3 + $0x60] sm:$0xf]  ;;  %v1361_v57 = vmul.f32 0.6931472, %v1858_v25  ;;  %v1396_v0 = vsel %vm1211_vm7, %v1378_v4, 0.0 }
 0x6b4   :  { %v1332_v30 = vmul.f32 %v1856_v21, %v1293_v28  ;;  %1863 = vlog2.f32 %v1343_v24  ;;  %v1397_v39 = vadd.f32 %v1396_v0, %v1395_v35 }
 0x6b5   :  { %1865 = vlog2.f32 %v1344_v45  ;;  %v1379_v14 = vsub.f32 0.0, %v1361_v57 }
 0x6b6   :  { %v1345_v32 = vadd.f32 1e-06, %v1332_v30  ;;  %v1860_v56 = vpop.eup %1859 }
 0x6b7   :  { %v1363_v41 = vmul.f32 0.6931472, %v1860_v56  ;;  %v1398_v36 = vsel %vm1211_vm7, %v1379_v14, 0.0 }
 0x6b8   :  { %1867 = vlog2.f32 %v1345_v32  ;;  %v1399_v11 = vadd.f32 %v1398_v36, %v1397_v39 }
 0x6b9   :  { %v1380_v48 = vsub.f32 0.0, %v1363_v41 }
 0x6ba   :  { %v1862_v38 = vpop.eup %1861 }
 0x6bb   :  { %v1365_v43 = vmul.f32 0.6931472, %v1862_v38  ;;  %v1400_v10 = vsel %vm1211_vm7, %v1380_v48, 0.0 }
 0x6bc   :  { %v1401_v49 = vadd.f32 %v1400_v10, %v1399_v11 }
 0x6bd   :  { %v1381_v31 = vsub.f32 0.0, %v1365_v43 }
 0x6be   :  { %v1864_v37 = vpop.eup %1863 }
 0x6bf   :  { %v1866_v40 = vpop.eup %1865  ;;  %v1367_v33 = vmul.f32 0.6931472, %v1864_v37  ;;  %v1402_v50 = vsel %vm1211_vm7, %v1381_v31, 0.0 }
 0x6c0   :  { %v1369_v51 = vmul.f32 0.6931472, %v1866_v40  ;;  %v1403_v53 = vadd.f32 %v1402_v50, %v1401_v49 }
 0x6c1   :  { %v1382_v7 = vsub.f32 0.0, %v1367_v33 }
 0x6c2   :  { %v1868_v27 = vpop.eup %1867  ;;  %v1383_v52 = vsub.f32 0.0, %v1369_v51 }
 0x6c3   :  { %v1371_v17 = vmul.f32 0.6931472, %v1868_v27  ;;  %v1404_v8 = vsel %vm1211_vm7, %v1382_v7, 0.0 }
 0x6c4   :  { %v1405_v55 = vadd.f32 %v1404_v8, %v1403_v53  ;;  %v1406_v13 = vsel %vm1211_vm7, %v1383_v52, 0.0 }
 0x6c5   :  { %v1384_v58 = vsub.f32 0.0, %v1371_v17 }
 0x6c6   :  { %v1407_v59 = vadd.f32 %v1406_v13, %v1405_v55 }
 0x6c7   :  { %v1409_v61 = vsel %vm1408_vm3, %v1384_v58, 0.0 }
 0x6c8   :  { %v1410_v60 = vadd.f32 %v1409_v61, %v1407_v59 }
 0x6ca   :  { %1411 = vadd.xlane.f32.xlu1 %v1410_v60 }
 0x757   :  { %v1412_v23 = vpop.xlane.xlu1 %1411 }
 0x758   :  { %v1413_v62 = vrot.slane %v1412_v23, 4 }
 0x75a   :  { %v1414_v63 = vadd.f32 %v1413_v62, %v1412_v23 }
 0x75c   :  { %v1415_v19 = vrot.slane %v1414_v63, 2 }
 0x75e   :  { %v1416_v2 = vadd.f32 %v1415_v19, %v1414_v63 }
 0x760   :  { %v1417_v3 = vrot.slane %v1416_v2, 1 }
 0x762   :  { %v1418_v6 = vadd.f32 %v1417_v3, %v1416_v2 }
 0x764   :  { %1715 = vpush %v1418_v6 }
 0x795   :  { %s1716_s5 = spop %1715 }
 0x796   :  { %s1422_s13 = smul.f32 0.01, %s1716_s5 }
 0x798   :  { %v1423_v5 = vstv %s1422_s13 }
 0x799   :  { %1425 = vst.msk [vmem:[#allocation4] sm:$0x1] %vm1424_vm6, %v1423_v5 }
 0x79a   :  { %1880 = shalt.err (!%p1877_p4)
}
 0x79b   :  { %s1881_s18 = scalar_lea.hbm %s2585_s8, 16 }
 0x79c   :  { %p1882_p5 = scmp.ne.s32.totalorder %s2585_s8, %s1881_s18  ;;  %p1885_p6 = scmp.lt.u32.totalorder %s1881_s18, %s2585_s8 }
 0x79e   :  { %p1887_p7 = pnand %p1885_p6, %p1882_p5 }
 0x7a0   :  { %1890 = shalt.err (!%p1887_p7)
}
 0x7a1   :  { %1435 = dma.vmem_to_hbm [thread:$0]  %s1433_s12, 16, %s2585_s8, [#allocation5]  }
 0x7a2   :  { %1891 = dma.done.wait [#allocation5], 16  }
 0x7a3   :  { %1892 = vsyncadd [#allocation5], 4294967280 }
 0x7a4   :  { %1439 = vsyncpa [#allocation5], 1 }

</bundles_post_ra>
